<compile_context>
chip_gen: v7x
topology: tpu7x:2x2x1
jax: 0.10.0
libtpu: 0.0.40
codegen_flags: <defaults>
</compile_context>

<pallas_src>
import jax
import jax.numpy as jnp
import numpy as np
import ml_dtypes
from jax.experimental import pallas as pl
from jax.experimental.pallas import tpu as pltpu

# ----------------------------- configuration -----------------------------
VOCAB = 16          # vocabulary_size
HIDDEN = 32         # lstm_num_hidden (4H = 128 = one vreg lane width)
LAYERS = 2          # lstm_num_layers (2-layer recurrence hard-coded in kernel)
SEQ = 8             # sequence length T
BATCH = 2           # batch size B


# ------------------------------ Pallas kernel -----------------------------
def _lstm_proj_kernel(ig0_ref,              # (T*B, 4H) f32: precomputed x@Wih0 + b0
                      whh0_ref,             # (H, 4H)  bf16
                      w1_ref,               # (2H, 4H) bf16: [Wih1 ; Whh1]
                      b1_ref,               # (1, 4H)  f32
                      wp_ref,               # (H, V)   bf16
                      bp_ref,               # (1, V)   f32
                      h0_ref, c0_ref,       # (2, B, H) f32 initial states
                      logits_ref,           # out: (T*B, V) f32
                      h_out_ref, c_out_ref, # out: (2, B, H) f32
                      hseq_ref):            # scratch: (T*B, H) f32
    TB = ig0_ref.shape[0]
    B = h0_ref.shape[1]
    H = h0_ref.shape[2]
    T = TB // B

    whh0 = whh0_ref[...]
    w1 = w1_ref[...]
    wp = wp_ref[...]
    # Hoist bias broadcast out of the (unrolled) loop — JAX does not CSE broadcasts.
    b1 = jnp.broadcast_to(b1_ref[...], (B, 4 * H))
    bp = bp_ref[...]

    h0 = h0_ref[0]
    c0 = c0_ref[0]
    h1 = h0_ref[1]
    c1 = c0_ref[1]

    def sigmoid(z):
        return 1.0 / (1.0 + jnp.exp(-z))

    def gates_to_hc(gates, c_prev):
        # One full-width sigmoid + one full-width tanh over the 4H=128-lane gates
        # vreg (EUP), then slice blocks — instead of 4 narrow transcendental calls.
        sg = sigmoid(gates)
        tg = jnp.tanh(gates)
        i = sg[:, 0 * H:1 * H]
        f = sg[:, 1 * H:2 * H]
        g = tg[:, 2 * H:3 * H]
        o = sg[:, 3 * H:4 * H]
        c_new = f * c_prev + i * g
        h_new = o * jnp.tanh(c_new)
        return h_new, c_new

    # Fully unrolled time loop (T is static at trace time).
    for t in range(T):
        # Layer 0: input contribution was hoisted (ig0); only the recurrent matmul
        # remains on the serial critical path.  bf16 operands, f32 accumulation.
        g0 = ig0_ref[pl.ds(t * B, B), :] + jnp.dot(
            h0.astype(jnp.bfloat16), whh0, preferred_element_type=jnp.float32)
        h0, c0 = gates_to_hc(g0, c0)

        # Layer 1: single fused matmul  [h0 | h1] @ [Wih1 ; Whh1]  (K = 2H = 64).
        xh = jnp.concatenate(
            [h0.astype(jnp.bfloat16), h1.astype(jnp.bfloat16)], axis=1)
        g1 = jnp.dot(xh, w1, preferred_element_type=jnp.float32) + b1
        h1, c1 = gates_to_hc(g1, c1)

        # Stage h1 for the batched projection (static offset store into VMEM scratch).
        hseq_ref[pl.ds(t * B, B), :] = h1

    # Output projection hoisted out of the recurrence: one (T*B,H)x(H,V) matmul
    # and a single contiguous store instead of T small masked stores.
    hs = hseq_ref[...].astype(jnp.bfloat16)
    logits_ref[...] = jnp.dot(hs, wp, preferred_element_type=jnp.float32) + bp

    h_out_ref[0] = h0
    h_out_ref[1] = h1
    c_out_ref[0] = c0
    c_out_ref[1] = c1


# ------------------------------ wrapper -----------------------------------
@jax.jit
def text_generation_forward(x, params, h_and_c=None):
    """x: int32 (T, B) token ids.  Returns (logits (T,B,V), (h, c)) like the nn.Module."""
    T, B = x.shape
    V, H = VOCAB, HIDDEN

    # Identity embedding composed with the layer-0 input projection is a row
    # gather: onehot(x) @ Wih0^T == Wih0^T[x].  Precompute all T*B layer-0 input
    # gate contributions (exact, f32) so they are off the serial recurrence.
    ig0 = (params["wih0_t"][x] + params["b0"]).reshape(T * B, 4 * H)

    if h_and_c is None:
        h0 = jnp.zeros((LAYERS, B, H), jnp.float32)
        c0 = jnp.zeros((LAYERS, B, H), jnp.float32)
    else:
        h0, c0 = h_and_c

    vmem = pl.BlockSpec(memory_space=pltpu.MemorySpace.VMEM)
    logits_flat, h_out, c_out = pl.pallas_call(
        _lstm_proj_kernel,
        out_shape=(
            jax.ShapeDtypeStruct((T * B, V), jnp.float32),      # logits (flat, lane-dense store)
            jax.ShapeDtypeStruct((LAYERS, B, H), jnp.float32),  # h
            jax.ShapeDtypeStruct((LAYERS, B, H), jnp.float32),  # c
        ),
        in_specs=[vmem] * 8,                 # 8 operands -> 8 specs
        out_specs=(vmem, vmem, vmem),
        scratch_shapes=[pltpu.VMEM((T * B, H), jnp.float32)],
    )(ig0, params["whh0"], params["w1"], params["b1"],
      params["wp"], params["bp"], h0, c0)

    return logits_flat.reshape(T, B, V), (h_out, c_out)


# --------------------------- parameter init -------------------------------
def init_params(key):
    """PyTorch-shaped LSTM / Linear parameters (uniform(-1/sqrt(H), 1/sqrt(H)))."""
    H, V = HIDDEN, VOCAB
    k = 1.0 / np.sqrt(H)
    keys = jax.random.split(key, 10)

    def u(kk, shape):
        return jax.random.uniform(kk, shape, jnp.float32, -k, k)

    return {
        "w_ih_l0": u(keys[0], (4 * H, V)), "w_hh_l0": u(keys[1], (4 * H, H)),
        "b_ih_l0": u(keys[2], (4 * H,)),   "b_hh_l0": u(keys[3], (4 * H,)),
        "w_ih_l1": u(keys[4], (4 * H, H)), "w_hh_l1": u(keys[5], (4 * H, H)),
        "b_ih_l1": u(keys[6], (4 * H,)),   "b_hh_l1": u(keys[7], (4 * H,)),
        "w_proj":  u(keys[8], (V, H)),     "b_proj":  u(keys[9], (V,)),
    }


def prepare_params(p):
    """Pre-transpose / fuse weights for the kernel; MXU operands shipped as bf16."""
    bf = jnp.bfloat16
    return {
        # used only in the wrapper gather (exact, f32)
        "wih0_t": p["w_ih_l0"].T,                              # (V, 4H)
        "b0": (p["b_ih_l0"] + p["b_hh_l0"])[None, :],          # (1, 4H)
        # kernel MXU operands (bf16) + biases (f32)
        "whh0": p["w_hh_l0"].T.astype(bf),                     # (H, 4H)
        "w1": jnp.concatenate([p["w_ih_l1"].T, p["w_hh_l1"].T],
                              axis=0).astype(bf),              # (2H, 4H)
        "b1": (p["b_ih_l1"] + p["b_hh_l1"])[None, :],          # (1, 4H)
        "wp": p["w_proj"].T.astype(bf),                        # (H, V)
        "bp": p["b_proj"][None, :],                            # (1, V)
    }


# --------------------------- numpy reference -------------------------------
def _np64(a):
    return np.asarray(jax.device_get(a)).astype(np.float64)


def _bf16_round(a):
    # same rounding the kernel applies to MXU operands
    return np.asarray(a, dtype=np.float32).astype(ml_dtypes.bfloat16).astype(np.float64)


def reference_forward(x, prep):
    """float64 reference that mirrors the module's math and the kernel's numerics
    (bf16-rounded matmul operands, high-precision accumulation/state math)."""
    x = np.asarray(x)
    T, B = x.shape
    H, V = HIDDEN, VOCAB
    wih0, b0 = _np64(prep["wih0_t"]), _np64(prep["b0"])
    whh0 = _np64(prep["whh0"])
    w1, b1 = _np64(prep["w1"]), _np64(prep["b1"])
    wih1, whh1 = w1[:H], w1[H:]
    wp, bp = _np64(prep["wp"]), _np64(prep["bp"])

    def sigmoid(z):
        return 1.0 / (1.0 + np.exp(-z))

    def cell(gates, c_prev):
        i = sigmoid(gates[:, 0 * H:1 * H])
        f = sigmoid(gates[:, 1 * H:2 * H])
        g = np.tanh(gates[:, 2 * H:3 * H])
        o = sigmoid(gates[:, 3 * H:4 * H])
        c_new = f * c_prev + i * g
        return o * np.tanh(c_new), c_new

    h = [np.zeros((B, H)) for _ in range(LAYERS)]
    c = [np.zeros((B, H)) for _ in range(LAYERS)]
    logits = np.zeros((T, B, V))
    for t in range(T):
        g0 = wih0[x[t]] + b0 + _bf16_round(h[0]) @ whh0
        h[0], c[0] = cell(g0, c[0])
        g1 = _bf16_round(h[0]) @ wih1 + _bf16_round(h[1]) @ whh1 + b1
        h[1], c[1] = cell(g1, c[1])
        logits[t] = _bf16_round(h[1]) @ wp + bp
    return logits, (np.stack(h, 0), np.stack(c, 0))


# --------------------------------- main ------------------------------------
if __name__ == "__main__":
    key = jax.random.PRNGKey(0)
    pkey, xkey = jax.random.split(key)
    params = prepare_params(init_params(pkey))

    x = jax.random.randint(xkey, (SEQ, BATCH), 0, VOCAB, dtype=jnp.int32)

    logits, (h, c) = text_generation_forward(x, params)
    jax.block_until_ready((logits, h, c))

    ref_logits, (ref_h, ref_c) = reference_forward(x, params)
    # Tolerance sized for bf16 MXU operands (Precision.DEFAULT) + EUP transcendental
    # approximations compounding through the T-step recurrence.
    np.testing.assert_allclose(np.asarray(logits), ref_logits, atol=2e-3, rtol=2e-3)
    np.testing.assert_allclose(np.asarray(h), ref_h, atol=2e-3, rtol=2e-3)
    np.testing.assert_allclose(np.asarray(c), ref_c, atol=2e-3, rtol=2e-3)

    assert logits.shape == (SEQ, BATCH, VOCAB)
    assert h.shape == (LAYERS, BATCH, HIDDEN) and c.shape == (LAYERS, BATCH, HIDDEN)

    print("KERNEL_OK")
</pallas_src>

<mosaic_0001>
module attributes {stable_mosaic.version = 11 : i64} {
  func.func @_lstm_proj_kernel(%arg0: memref<16x128xf32, #tpu.memory_space<vmem>>, %arg1: memref<32x128xbf16, #tpu.memory_space<vmem>>, %arg2: memref<64x128xbf16, #tpu.memory_space<vmem>>, %arg3: memref<1x128xf32, #tpu.memory_space<vmem>>, %arg4: memref<32x16xbf16, #tpu.memory_space<vmem>>, %arg5: memref<1x16xf32, #tpu.memory_space<vmem>>, %arg6: memref<2x2x32xf32, #tpu.memory_space<vmem>>, %arg7: memref<2x2x32xf32, #tpu.memory_space<vmem>>, %arg8: memref<16x16xf32, #tpu.memory_space<vmem>>, %arg9: memref<2x2x32xf32, #tpu.memory_space<vmem>>, %arg10: memref<2x2x32xf32, #tpu.memory_space<vmem>>, %arg11: memref<16x32xf32, #tpu.memory_space<vmem>>) attributes {dimension_semantics = [], scalar_prefetch = 0 : i64, scratch_operands = 1 : i64, tpu.core_type = #tpu.core_type<tc>} {
    %c0 = arith.constant 0 : index
    %c0_0 = arith.constant 0 : index
    %0 = vector.load %arg1[%c0, %c0_0] : memref<32x128xbf16, #tpu.memory_space<vmem>>, vector<32x128xbf16>
    %c0_1 = arith.constant 0 : index
    %c0_2 = arith.constant 0 : index
    %1 = vector.load %arg2[%c0_1, %c0_2] : memref<64x128xbf16, #tpu.memory_space<vmem>>, vector<64x128xbf16>
    %c0_3 = arith.constant 0 : index
    %c0_4 = arith.constant 0 : index
    %2 = vector.load %arg4[%c0_3, %c0_4] : memref<32x16xbf16, #tpu.memory_space<vmem>>, vector<32x16xbf16>
    %c0_5 = arith.constant 0 : index
    %c0_6 = arith.constant 0 : index
    %3 = vector.load %arg3[%c0_5, %c0_6] : memref<1x128xf32, #tpu.memory_space<vmem>>, vector<1x128xf32>
    %4 = vector.shape_cast %3 : vector<1x128xf32> to vector<1x128xf32>
    %5 = vector.broadcast %4 : vector<1x128xf32> to vector<2x128xf32>
    %c0_7 = arith.constant 0 : index
    %c0_8 = arith.constant 0 : index
    %6 = vector.load %arg5[%c0_7, %c0_8] : memref<1x16xf32, #tpu.memory_space<vmem>>, vector<1x16xf32>
    %c0_9 = arith.constant 0 : index
    %c0_10 = arith.constant 0 : index
    %c0_11 = arith.constant 0 : index
    %7 = vector.load %arg6[%c0_9, %c0_10, %c0_11] : memref<2x2x32xf32, #tpu.memory_space<vmem>>, vector<1x2x32xf32>
    %8 = vector.shape_cast %7 : vector<1x2x32xf32> to vector<2x32xf32>
    %c0_12 = arith.constant 0 : index
    %c0_13 = arith.constant 0 : index
    %c0_14 = arith.constant 0 : index
    %9 = vector.load %arg7[%c0_12, %c0_13, %c0_14] : memref<2x2x32xf32, #tpu.memory_space<vmem>>, vector<1x2x32xf32>
    %10 = vector.shape_cast %9 : vector<1x2x32xf32> to vector<2x32xf32>
    %c1 = arith.constant 1 : index
    %c0_15 = arith.constant 0 : index
    %c0_16 = arith.constant 0 : index
    %11 = vector.load %arg6[%c1, %c0_15, %c0_16] : memref<2x2x32xf32, #tpu.memory_space<vmem>>, vector<1x2x32xf32>
    %12 = vector.shape_cast %11 : vector<1x2x32xf32> to vector<2x32xf32>
    %c1_17 = arith.constant 1 : index
    %c0_18 = arith.constant 0 : index
    %c0_19 = arith.constant 0 : index
    %13 = vector.load %arg7[%c1_17, %c0_18, %c0_19] : memref<2x2x32xf32, #tpu.memory_space<vmem>>, vector<1x2x32xf32>
    %14 = vector.shape_cast %13 : vector<1x2x32xf32> to vector<2x32xf32>
    %c0_20 = arith.constant 0 : index
    %c0_21 = arith.constant 0 : index
    %15 = vector.load %arg0[%c0_20, %c0_21] : memref<16x128xf32, #tpu.memory_space<vmem>>, vector<2x128xf32>
    %16 = arith.truncf %8 : vector<2x32xf32> to vector<2x32xbf16>
    %cst = arith.constant dense<0.000000e+00> : vector<2x128xf32>
    %17 = tpu.matmul %16, %0, %cst {dimension_numbers = #tpu.dot_dimension_numbers<[1], [0], [0], [1], [0, 0, 1, 1], [], []>} : vector<2x32xbf16>, vector<32x128xbf16>, vector<2x128xf32> -> vector<2x128xf32>
    %18 = arith.addf %15, %17 : vector<2x128xf32>
    %cst_22 = arith.constant 0.000000e+00 : f32
    %19 = vector.broadcast %cst_22 : f32 to vector<2x128xf32>
    %20 = arith.subf %19, %18 : vector<2x128xf32>
    %21 = math.exp %20 : vector<2x128xf32>
    %cst_23 = arith.constant 1.000000e+00 : f32
    %22 = vector.broadcast %cst_23 : f32 to vector<2x128xf32>
    %23 = arith.addf %22, %21 : vector<2x128xf32>
    %cst_24 = arith.constant 1.000000e+00 : f32
    %24 = vector.broadcast %cst_24 : f32 to vector<2x128xf32>
    %25 = arith.divf %24, %23 : vector<2x128xf32>
    %26 = math.tanh %18 : vector<2x128xf32>
    %27 = vector.extract_strided_slice %25 {offsets = [0, 0], sizes = [2, 32], strides = [1, 1]} : vector<2x128xf32> to vector<2x32xf32>
    %28 = vector.extract_strided_slice %25 {offsets = [0, 32], sizes = [2, 32], strides = [1, 1]} : vector<2x128xf32> to vector<2x32xf32>
    %29 = vector.extract_strided_slice %26 {offsets = [0, 64], sizes = [2, 32], strides = [1, 1]} : vector<2x128xf32> to vector<2x32xf32>
    %30 = vector.extract_strided_slice %25 {offsets = [0, 96], sizes = [2, 32], strides = [1, 1]} : vector<2x128xf32> to vector<2x32xf32>
    %31 = arith.mulf %28, %10 : vector<2x32xf32>
    %32 = arith.mulf %27, %29 : vector<2x32xf32>
    %33 = arith.addf %31, %32 : vector<2x32xf32>
    %34 = math.tanh %33 : vector<2x32xf32>
    %35 = arith.mulf %30, %34 : vector<2x32xf32>
    %36 = arith.truncf %35 : vector<2x32xf32> to vector<2x32xbf16>
    %37 = arith.truncf %12 : vector<2x32xf32> to vector<2x32xbf16>
    %38 = tpu.concatenate %36, %37 in 1 : vector<2x32xbf16>, vector<2x32xbf16> -> vector<2x64xbf16>
    %cst_25 = arith.constant dense<0.000000e+00> : vector<2x128xf32>
    %39 = tpu.matmul %38, %1, %cst_25 {dimension_numbers = #tpu.dot_dimension_numbers<[1], [0], [0], [1], [0, 0, 1, 1], [], []>} : vector<2x64xbf16>, vector<64x128xbf16>, vector<2x128xf32> -> vector<2x128xf32>
    %40 = arith.addf %39, %5 : vector<2x128xf32>
    %cst_26 = arith.constant 0.000000e+00 : f32
    %41 = vector.broadcast %cst_26 : f32 to vector<2x128xf32>
    %42 = arith.subf %41, %40 : vector<2x128xf32>
    %43 = math.exp %42 : vector<2x128xf32>
    %cst_27 = arith.constant 1.000000e+00 : f32
    %44 = vector.broadcast %cst_27 : f32 to vector<2x128xf32>
    %45 = arith.addf %44, %43 : vector<2x128xf32>
    %cst_28 = arith.constant 1.000000e+00 : f32
    %46 = vector.broadcast %cst_28 : f32 to vector<2x128xf32>
    %47 = arith.divf %46, %45 : vector<2x128xf32>
    %48 = math.tanh %40 : vector<2x128xf32>
    %49 = vector.extract_strided_slice %47 {offsets = [0, 0], sizes = [2, 32], strides = [1, 1]} : vector<2x128xf32> to vector<2x32xf32>
    %50 = vector.extract_strided_slice %47 {offsets = [0, 32], sizes = [2, 32], strides = [1, 1]} : vector<2x128xf32> to vector<2x32xf32>
    %51 = vector.extract_strided_slice %48 {offsets = [0, 64], sizes = [2, 32], strides = [1, 1]} : vector<2x128xf32> to vector<2x32xf32>
    %52 = vector.extract_strided_slice %47 {offsets = [0, 96], sizes = [2, 32], strides = [1, 1]} : vector<2x128xf32> to vector<2x32xf32>
    %53 = arith.mulf %50, %14 : vector<2x32xf32>
    %54 = arith.mulf %49, %51 : vector<2x32xf32>
    %55 = arith.addf %53, %54 : vector<2x32xf32>
    %56 = math.tanh %55 : vector<2x32xf32>
    %57 = arith.mulf %52, %56 : vector<2x32xf32>
    %c0_29 = arith.constant 0 : index
    %c0_30 = arith.constant 0 : index
    %58 = vector.load %arg11[%c0_29, %c0_30] : memref<16x32xf32, #tpu.memory_space<vmem>>, vector<2x32xf32>
    tpu.vector_store %arg11[%c0_29, %c0_30], %57 {strides = array<i32>} : memref<16x32xf32, #tpu.memory_space<vmem>>, vector<2x32xf32>,
    %c2 = arith.constant 2 : index
    %c0_31 = arith.constant 0 : index
    %59 = vector.load %arg0[%c2, %c0_31] : memref<16x128xf32, #tpu.memory_space<vmem>>, vector<2x128xf32>
    %60 = arith.truncf %35 : vector<2x32xf32> to vector<2x32xbf16>
    %cst_32 = arith.constant dense<0.000000e+00> : vector<2x128xf32>
    %61 = tpu.matmul %60, %0, %cst_32 {dimension_numbers = #tpu.dot_dimension_numbers<[1], [0], [0], [1], [0, 0, 1, 1], [], []>} : vector<2x32xbf16>, vector<32x128xbf16>, vector<2x128xf32> -> vector<2x128xf32>
    %62 = arith.addf %59, %61 : vector<2x128xf32>
    %cst_33 = arith.constant 0.000000e+00 : f32
    %63 = vector.broadcast %cst_33 : f32 to vector<2x128xf32>
    %64 = arith.subf %63, %62 : vector<2x128xf32>
    %65 = math.exp %64 : vector<2x128xf32>
    %cst_34 = arith.constant 1.000000e+00 : f32
    %66 = vector.broadcast %cst_34 : f32 to vector<2x128xf32>
    %67 = arith.addf %66, %65 : vector<2x128xf32>
    %cst_35 = arith.constant 1.000000e+00 : f32
    %68 = vector.broadcast %cst_35 : f32 to vector<2x128xf32>
    %69 = arith.divf %68, %67 : vector<2x128xf32>
    %70 = math.tanh %62 : vector<2x128xf32>
    %71 = vector.extract_strided_slice %69 {offsets = [0, 0], sizes = [2, 32], strides = [1, 1]} : vector<2x128xf32> to vector<2x32xf32>
    %72 = vector.extract_strided_slice %69 {offsets = [0, 32], sizes = [2, 32], strides = [1, 1]} : vector<2x128xf32> to vector<2x32xf32>
    %73 = vector.extract_strided_slice %70 {offsets = [0, 64], sizes = [2, 32], strides = [1, 1]} : vector<2x128xf32> to vector<2x32xf32>
    %74 = vector.extract_strided_slice %69 {offsets = [0, 96], sizes = [2, 32], strides = [1, 1]} : vector<2x128xf32> to vector<2x32xf32>
    %75 = arith.mulf %72, %33 : vector<2x32xf32>
    %76 = arith.mulf %71, %73 : vector<2x32xf32>
    %77 = arith.addf %75, %76 : vector<2x32xf32>
    %78 = math.tanh %77 : vector<2x32xf32>
    %79 = arith.mulf %74, %78 : vector<2x32xf32>
    %80 = arith.truncf %79 : vector<2x32xf32> to vector<2x32xbf16>
    %81 = arith.truncf %57 : vector<2x32xf32> to vector<2x32xbf16>
    %82 = tpu.concatenate %80, %81 in 1 : vector<2x32xbf16>, vector<2x32xbf16> -> vector<2x64xbf16>
    %cst_36 = arith.constant dense<0.000000e+00> : vector<2x128xf32>
    %83 = tpu.matmul %82, %1, %cst_36 {dimension_numbers = #tpu.dot_dimension_numbers<[1], [0], [0], [1], [0, 0, 1, 1], [], []>} : vector<2x64xbf16>, vector<64x128xbf16>, vector<2x128xf32> -> vector<2x128xf32>
    %84 = arith.addf %83, %5 : vector<2x128xf32>
    %cst_37 = arith.constant 0.000000e+00 : f32
    %85 = vector.broadcast %cst_37 : f32 to vector<2x128xf32>
    %86 = arith.subf %85, %84 : vector<2x128xf32>
    %87 = math.exp %86 : vector<2x128xf32>
    %cst_38 = arith.constant 1.000000e+00 : f32
    %88 = vector.broadcast %cst_38 : f32 to vector<2x128xf32>
    %89 = arith.addf %88, %87 : vector<2x128xf32>
    %cst_39 = arith.constant 1.000000e+00 : f32
    %90 = vector.broadcast %cst_39 : f32 to vector<2x128xf32>
    %91 = arith.divf %90, %89 : vector<2x128xf32>
    %92 = math.tanh %84 : vector<2x128xf32>
    %93 = vector.extract_strided_slice %91 {offsets = [0, 0], sizes = [2, 32], strides = [1, 1]} : vector<2x128xf32> to vector<2x32xf32>
    %94 = vector.extract_strided_slice %91 {offsets = [0, 32], sizes = [2, 32], strides = [1, 1]} : vector<2x128xf32> to vector<2x32xf32>
    %95 = vector.extract_strided_slice %92 {offsets = [0, 64], sizes = [2, 32], strides = [1, 1]} : vector<2x128xf32> to vector<2x32xf32>
    %96 = vector.extract_strided_slice %91 {offsets = [0, 96], sizes = [2, 32], strides = [1, 1]} : vector<2x128xf32> to vector<2x32xf32>
    %97 = arith.mulf %94, %55 : vector<2x32xf32>
    %98 = arith.mulf %93, %95 : vector<2x32xf32>
    %99 = arith.addf %97, %98 : vector<2x32xf32>
    %100 = math.tanh %99 : vector<2x32xf32>
    %101 = arith.mulf %96, %100 : vector<2x32xf32>
    %c2_40 = arith.constant 2 : index
    %c0_41 = arith.constant 0 : index
    %102 = vector.load %arg11[%c2_40, %c0_41] : memref<16x32xf32, #tpu.memory_space<vmem>>, vector<2x32xf32>
    tpu.vector_store %arg11[%c2_40, %c0_41], %101 {strides = array<i32>} : memref<16x32xf32, #tpu.memory_space<vmem>>, vector<2x32xf32>,
    %c4 = arith.constant 4 : index
    %c0_42 = arith.constant 0 : index
    %103 = vector.load %arg0[%c4, %c0_42] : memref<16x128xf32, #tpu.memory_space<vmem>>, vector<2x128xf32>
    %104 = arith.truncf %79 : vector<2x32xf32> to vector<2x32xbf16>
    %cst_43 = arith.constant dense<0.000000e+00> : vector<2x128xf32>
    %105 = tpu.matmul %104, %0, %cst_43 {dimension_numbers = #tpu.dot_dimension_numbers<[1], [0], [0], [1], [0, 0, 1, 1], [], []>} : vector<2x32xbf16>, vector<32x128xbf16>, vector<2x128xf32> -> vector<2x128xf32>
    %106 = arith.addf %103, %105 : vector<2x128xf32>
    %cst_44 = arith.constant 0.000000e+00 : f32
    %107 = vector.broadcast %cst_44 : f32 to vector<2x128xf32>
    %108 = arith.subf %107, %106 : vector<2x128xf32>
    %109 = math.exp %108 : vector<2x128xf32>
    %cst_45 = arith.constant 1.000000e+00 : f32
    %110 = vector.broadcast %cst_45 : f32 to vector<2x128xf32>
    %111 = arith.addf %110, %109 : vector<2x128xf32>
    %cst_46 = arith.constant 1.000000e+00 : f32
    %112 = vector.broadcast %cst_46 : f32 to vector<2x128xf32>
    %113 = arith.divf %112, %111 : vector<2x128xf32>
    %114 = math.tanh %106 : vector<2x128xf32>
    %115 = vector.extract_strided_slice %113 {offsets = [0, 0], sizes = [2, 32], strides = [1, 1]} : vector<2x128xf32> to vector<2x32xf32>
    %116 = vector.extract_strided_slice %113 {offsets = [0, 32], sizes = [2, 32], strides = [1, 1]} : vector<2x128xf32> to vector<2x32xf32>
    %117 = vector.extract_strided_slice %114 {offsets = [0, 64], sizes = [2, 32], strides = [1, 1]} : vector<2x128xf32> to vector<2x32xf32>
    %118 = vector.extract_strided_slice %113 {offsets = [0, 96], sizes = [2, 32], strides = [1, 1]} : vector<2x128xf32> to vector<2x32xf32>
    %119 = arith.mulf %116, %77 : vector<2x32xf32>
    %120 = arith.mulf %115, %117 : vector<2x32xf32>
    %121 = arith.addf %119, %120 : vector<2x32xf32>
    %122 = math.tanh %121 : vector<2x32xf32>
    %123 = arith.mulf %118, %122 : vector<2x32xf32>
    %124 = arith.truncf %123 : vector<2x32xf32> to vector<2x32xbf16>
    %125 = arith.truncf %101 : vector<2x32xf32> to vector<2x32xbf16>
    %126 = tpu.concatenate %124, %125 in 1 : vector<2x32xbf16>, vector<2x32xbf16> -> vector<2x64xbf16>
    %cst_47 = arith.constant dense<0.000000e+00> : vector<2x128xf32>
    %127 = tpu.matmul %126, %1, %cst_47 {dimension_numbers = #tpu.dot_dimension_numbers<[1], [0], [0], [1], [0, 0, 1, 1], [], []>} : vector<2x64xbf16>, vector<64x128xbf16>, vector<2x128xf32> -> vector<2x128xf32>
    %128 = arith.addf %127, %5 : vector<2x128xf32>
    %cst_48 = arith.constant 0.000000e+00 : f32
    %129 = vector.broadcast %cst_48 : f32 to vector<2x128xf32>
    %130 = arith.subf %129, %128 : vector<2x128xf32>
    %131 = math.exp %130 : vector<2x128xf32>
    %cst_49 = arith.constant 1.000000e+00 : f32
    %132 = vector.broadcast %cst_49 : f32 to vector<2x128xf32>
    %133 = arith.addf %132, %131 : vector<2x128xf32>
    %cst_50 = arith.constant 1.000000e+00 : f32
    %134 = vector.broadcast %cst_50 : f32 to vector<2x128xf32>
    %135 = arith.divf %134, %133 : vector<2x128xf32>
    %136 = math.tanh %128 : vector<2x128xf32>
    %137 = vector.extract_strided_slice %135 {offsets = [0, 0], sizes = [2, 32], strides = [1, 1]} : vector<2x128xf32> to vector<2x32xf32>
    %138 = vector.extract_strided_slice %135 {offsets = [0, 32], sizes = [2, 32], strides = [1, 1]} : vector<2x128xf32> to vector<2x32xf32>
    %139 = vector.extract_strided_slice %136 {offsets = [0, 64], sizes = [2, 32], strides = [1, 1]} : vector<2x128xf32> to vector<2x32xf32>
    %140 = vector.extract_strided_slice %135 {offsets = [0, 96], sizes = [2, 32], strides = [1, 1]} : vector<2x128xf32> to vector<2x32xf32>
    %141 = arith.mulf %138, %99 : vector<2x32xf32>
    %142 = arith.mulf %137, %139 : vector<2x32xf32>
    %143 = arith.addf %141, %142 : vector<2x32xf32>
    %144 = math.tanh %143 : vector<2x32xf32>
    %145 = arith.mulf %140, %144 : vector<2x32xf32>
    %c4_51 = arith.constant 4 : index
    %c0_52 = arith.constant 0 : index
    %146 = vector.load %arg11[%c4_51, %c0_52] : memref<16x32xf32, #tpu.memory_space<vmem>>, vector<2x32xf32>
    tpu.vector_store %arg11[%c4_51, %c0_52], %145 {strides = array<i32>} : memref<16x32xf32, #tpu.memory_space<vmem>>, vector<2x32xf32>,
    %c6 = arith.constant 6 : index
    %c0_53 = arith.constant 0 : index
    %147 = vector.load %arg0[%c6, %c0_53] : memref<16x128xf32, #tpu.memory_space<vmem>>, vector<2x128xf32>
    %148 = arith.truncf %123 : vector<2x32xf32> to vector<2x32xbf16>
    %cst_54 = arith.constant dense<0.000000e+00> : vector<2x128xf32>
    %149 = tpu.matmul %148, %0, %cst_54 {dimension_numbers = #tpu.dot_dimension_numbers<[1], [0], [0], [1], [0, 0, 1, 1], [], []>} : vector<2x32xbf16>, vector<32x128xbf16>, vector<2x128xf32> -> vector<2x128xf32>
    %150 = arith.addf %147, %149 : vector<2x128xf32>
    %cst_55 = arith.constant 0.000000e+00 : f32
    %151 = vector.broadcast %cst_55 : f32 to vector<2x128xf32>
    %152 = arith.subf %151, %150 : vector<2x128xf32>
    %153 = math.exp %152 : vector<2x128xf32>
    %cst_56 = arith.constant 1.000000e+00 : f32
    %154 = vector.broadcast %cst_56 : f32 to vector<2x128xf32>
    %155 = arith.addf %154, %153 : vector<2x128xf32>
    %cst_57 = arith.constant 1.000000e+00 : f32
    %156 = vector.broadcast %cst_57 : f32 to vector<2x128xf32>
    %157 = arith.divf %156, %155 : vector<2x128xf32>
    %158 = math.tanh %150 : vector<2x128xf32>
    %159 = vector.extract_strided_slice %157 {offsets = [0, 0], sizes = [2, 32], strides = [1, 1]} : vector<2x128xf32> to vector<2x32xf32>
    %160 = vector.extract_strided_slice %157 {offsets = [0, 32], sizes = [2, 32], strides = [1, 1]} : vector<2x128xf32> to vector<2x32xf32>
    %161 = vector.extract_strided_slice %158 {offsets = [0, 64], sizes = [2, 32], strides = [1, 1]} : vector<2x128xf32> to vector<2x32xf32>
    %162 = vector.extract_strided_slice %157 {offsets = [0, 96], sizes = [2, 32], strides = [1, 1]} : vector<2x128xf32> to vector<2x32xf32>
    %163 = arith.mulf %160, %121 : vector<2x32xf32>
    %164 = arith.mulf %159, %161 : vector<2x32xf32>
    %165 = arith.addf %163, %164 : vector<2x32xf32>
    %166 = math.tanh %165 : vector<2x32xf32>
    %167 = arith.mulf %162, %166 : vector<2x32xf32>
    %168 = arith.truncf %167 : vector<2x32xf32> to vector<2x32xbf16>
    %169 = arith.truncf %145 : vector<2x32xf32> to vector<2x32xbf16>
    %170 = tpu.concatenate %168, %169 in 1 : vector<2x32xbf16>, vector<2x32xbf16> -> vector<2x64xbf16>
    %cst_58 = arith.constant dense<0.000000e+00> : vector<2x128xf32>
    %171 = tpu.matmul %170, %1, %cst_58 {dimension_numbers = #tpu.dot_dimension_numbers<[1], [0], [0], [1], [0, 0, 1, 1], [], []>} : vector<2x64xbf16>, vector<64x128xbf16>, vector<2x128xf32> -> vector<2x128xf32>
    %172 = arith.addf %171, %5 : vector<2x128xf32>
    %cst_59 = arith.constant 0.000000e+00 : f32
    %173 = vector.broadcast %cst_59 : f32 to vector<2x128xf32>
    %174 = arith.subf %173, %172 : vector<2x128xf32>
    %175 = math.exp %174 : vector<2x128xf32>
    %cst_60 = arith.constant 1.000000e+00 : f32
    %176 = vector.broadcast %cst_60 : f32 to vector<2x128xf32>
    %177 = arith.addf %176, %175 : vector<2x128xf32>
    %cst_61 = arith.constant 1.000000e+00 : f32
    %178 = vector.broadcast %cst_61 : f32 to vector<2x128xf32>
    %179 = arith.divf %178, %177 : vector<2x128xf32>
    %180 = math.tanh %172 : vector<2x128xf32>
    %181 = vector.extract_strided_slice %179 {offsets = [0, 0], sizes = [2, 32], strides = [1, 1]} : vector<2x128xf32> to vector<2x32xf32>
    %182 = vector.extract_strided_slice %179 {offsets = [0, 32], sizes = [2, 32], strides = [1, 1]} : vector<2x128xf32> to vector<2x32xf32>
    %183 = vector.extract_strided_slice %180 {offsets = [0, 64], sizes = [2, 32], strides = [1, 1]} : vector<2x128xf32> to vector<2x32xf32>
    %184 = vector.extract_strided_slice %179 {offsets = [0, 96], sizes = [2, 32], strides = [1, 1]} : vector<2x128xf32> to vector<2x32xf32>
    %185 = arith.mulf %182, %143 : vector<2x32xf32>
    %186 = arith.mulf %181, %183 : vector<2x32xf32>
    %187 = arith.addf %185, %186 : vector<2x32xf32>
    %188 = math.tanh %187 : vector<2x32xf32>
    %189 = arith.mulf %184, %188 : vector<2x32xf32>
    %c6_62 = arith.constant 6 : index
    %c0_63 = arith.constant 0 : index
    %190 = vector.load %arg11[%c6_62, %c0_63] : memref<16x32xf32, #tpu.memory_space<vmem>>, vector<2x32xf32>
    tpu.vector_store %arg11[%c6_62, %c0_63], %189 {strides = array<i32>} : memref<16x32xf32, #tpu.memory_space<vmem>>, vector<2x32xf32>,
    %c8 = arith.constant 8 : index
    %c0_64 = arith.constant 0 : index
    %191 = vector.load %arg0[%c8, %c0_64] : memref<16x128xf32, #tpu.memory_space<vmem>>, vector<2x128xf32>
    %192 = arith.truncf %167 : vector<2x32xf32> to vector<2x32xbf16>
    %cst_65 = arith.constant dense<0.000000e+00> : vector<2x128xf32>
    %193 = tpu.matmul %192, %0, %cst_65 {dimension_numbers = #tpu.dot_dimension_numbers<[1], [0], [0], [1], [0, 0, 1, 1], [], []>} : vector<2x32xbf16>, vector<32x128xbf16>, vector<2x128xf32> -> vector<2x128xf32>
    %194 = arith.addf %191, %193 : vector<2x128xf32>
    %cst_66 = arith.constant 0.000000e+00 : f32
    %195 = vector.broadcast %cst_66 : f32 to vector<2x128xf32>
    %196 = arith.subf %195, %194 : vector<2x128xf32>
    %197 = math.exp %196 : vector<2x128xf32>
    %cst_67 = arith.constant 1.000000e+00 : f32
    %198 = vector.broadcast %cst_67 : f32 to vector<2x128xf32>
    %199 = arith.addf %198, %197 : vector<2x128xf32>
    %cst_68 = arith.constant 1.000000e+00 : f32
    %200 = vector.broadcast %cst_68 : f32 to vector<2x128xf32>
    %201 = arith.divf %200, %199 : vector<2x128xf32>
    %202 = math.tanh %194 : vector<2x128xf32>
    %203 = vector.extract_strided_slice %201 {offsets = [0, 0], sizes = [2, 32], strides = [1, 1]} : vector<2x128xf32> to vector<2x32xf32>
    %204 = vector.extract_strided_slice %201 {offsets = [0, 32], sizes = [2, 32], strides = [1, 1]} : vector<2x128xf32> to vector<2x32xf32>
    %205 = vector.extract_strided_slice %202 {offsets = [0, 64], sizes = [2, 32], strides = [1, 1]} : vector<2x128xf32> to vector<2x32xf32>
    %206 = vector.extract_strided_slice %201 {offsets = [0, 96], sizes = [2, 32], strides = [1, 1]} : vector<2x128xf32> to vector<2x32xf32>
    %207 = arith.mulf %204, %165 : vector<2x32xf32>
    %208 = arith.mulf %203, %205 : vector<2x32xf32>
    %209 = arith.addf %207, %208 : vector<2x32xf32>
    %210 = math.tanh %209 : vector<2x32xf32>
    %211 = arith.mulf %206, %210 : vector<2x32xf32>
    %212 = arith.truncf %211 : vector<2x32xf32> to vector<2x32xbf16>
    %213 = arith.truncf %189 : vector<2x32xf32> to vector<2x32xbf16>
    %214 = tpu.concatenate %212, %213 in 1 : vector<2x32xbf16>, vector<2x32xbf16> -> vector<2x64xbf16>
    %cst_69 = arith.constant dense<0.000000e+00> : vector<2x128xf32>
    %215 = tpu.matmul %214, %1, %cst_69 {dimension_numbers = #tpu.dot_dimension_numbers<[1], [0], [0], [1], [0, 0, 1, 1], [], []>} : vector<2x64xbf16>, vector<64x128xbf16>, vector<2x128xf32> -> vector<2x128xf32>
    %216 = arith.addf %215, %5 : vector<2x128xf32>
    %cst_70 = arith.constant 0.000000e+00 : f32
    %217 = vector.broadcast %cst_70 : f32 to vector<2x128xf32>
    %218 = arith.subf %217, %216 : vector<2x128xf32>
    %219 = math.exp %218 : vector<2x128xf32>
    %cst_71 = arith.constant 1.000000e+00 : f32
    %220 = vector.broadcast %cst_71 : f32 to vector<2x128xf32>
    %221 = arith.addf %220, %219 : vector<2x128xf32>
    %cst_72 = arith.constant 1.000000e+00 : f32
    %222 = vector.broadcast %cst_72 : f32 to vector<2x128xf32>
    %223 = arith.divf %222, %221 : vector<2x128xf32>
    %224 = math.tanh %216 : vector<2x128xf32>
    %225 = vector.extract_strided_slice %223 {offsets = [0, 0], sizes = [2, 32], strides = [1, 1]} : vector<2x128xf32> to vector<2x32xf32>
    %226 = vector.extract_strided_slice %223 {offsets = [0, 32], sizes = [2, 32], strides = [1, 1]} : vector<2x128xf32> to vector<2x32xf32>
    %227 = vector.extract_strided_slice %224 {offsets = [0, 64], sizes = [2, 32], strides = [1, 1]} : vector<2x128xf32> to vector<2x32xf32>
    %228 = vector.extract_strided_slice %223 {offsets = [0, 96], sizes = [2, 32], strides = [1, 1]} : vector<2x128xf32> to vector<2x32xf32>
    %229 = arith.mulf %226, %187 : vector<2x32xf32>
    %230 = arith.mulf %225, %227 : vector<2x32xf32>
    %231 = arith.addf %229, %230 : vector<2x32xf32>
    %232 = math.tanh %231 : vector<2x32xf32>
    %233 = arith.mulf %228, %232 : vector<2x32xf32>
    %c8_73 = arith.constant 8 : index
    %c0_74 = arith.constant 0 : index
    %234 = vector.load %arg11[%c8_73, %c0_74] : memref<16x32xf32, #tpu.memory_space<vmem>>, vector<2x32xf32>
    tpu.vector_store %arg11[%c8_73, %c0_74], %233 {strides = array<i32>} : memref<16x32xf32, #tpu.memory_space<vmem>>, vector<2x32xf32>,
    %c10 = arith.constant 10 : index
    %c0_75 = arith.constant 0 : index
    %235 = vector.load %arg0[%c10, %c0_75] : memref<16x128xf32, #tpu.memory_space<vmem>>, vector<2x128xf32>
    %236 = arith.truncf %211 : vector<2x32xf32> to vector<2x32xbf16>
    %cst_76 = arith.constant dense<0.000000e+00> : vector<2x128xf32>
    %237 = tpu.matmul %236, %0, %cst_76 {dimension_numbers = #tpu.dot_dimension_numbers<[1], [0], [0], [1], [0, 0, 1, 1], [], []>} : vector<2x32xbf16>, vector<32x128xbf16>, vector<2x128xf32> -> vector<2x128xf32>
    %238 = arith.addf %235, %237 : vector<2x128xf32>
    %cst_77 = arith.constant 0.000000e+00 : f32
    %239 = vector.broadcast %cst_77 : f32 to vector<2x128xf32>
    %240 = arith.subf %239, %238 : vector<2x128xf32>
    %241 = math.exp %240 : vector<2x128xf32>
    %cst_78 = arith.constant 1.000000e+00 : f32
    %242 = vector.broadcast %cst_78 : f32 to vector<2x128xf32>
    %243 = arith.addf %242, %241 : vector<2x128xf32>
    %cst_79 = arith.constant 1.000000e+00 : f32
    %244 = vector.broadcast %cst_79 : f32 to vector<2x128xf32>
    %245 = arith.divf %244, %243 : vector<2x128xf32>
    %246 = math.tanh %238 : vector<2x128xf32>
    %247 = vector.extract_strided_slice %245 {offsets = [0, 0], sizes = [2, 32], strides = [1, 1]} : vector<2x128xf32> to vector<2x32xf32>
    %248 = vector.extract_strided_slice %245 {offsets = [0, 32], sizes = [2, 32], strides = [1, 1]} : vector<2x128xf32> to vector<2x32xf32>
    %249 = vector.extract_strided_slice %246 {offsets = [0, 64], sizes = [2, 32], strides = [1, 1]} : vector<2x128xf32> to vector<2x32xf32>
    %250 = vector.extract_strided_slice %245 {offsets = [0, 96], sizes = [2, 32], strides = [1, 1]} : vector<2x128xf32> to vector<2x32xf32>
    %251 = arith.mulf %248, %209 : vector<2x32xf32>
    %252 = arith.mulf %247, %249 : vector<2x32xf32>
    %253 = arith.addf %251, %252 : vector<2x32xf32>
    %254 = math.tanh %253 : vector<2x32xf32>
    %255 = arith.mulf %250, %254 : vector<2x32xf32>
    %256 = arith.truncf %255 : vector<2x32xf32> to vector<2x32xbf16>
    %257 = arith.truncf %233 : vector<2x32xf32> to vector<2x32xbf16>
    %258 = tpu.concatenate %256, %257 in 1 : vector<2x32xbf16>, vector<2x32xbf16> -> vector<2x64xbf16>
    %cst_80 = arith.constant dense<0.000000e+00> : vector<2x128xf32>
    %259 = tpu.matmul %258, %1, %cst_80 {dimension_numbers = #tpu.dot_dimension_numbers<[1], [0], [0], [1], [0, 0, 1, 1], [], []>} : vector<2x64xbf16>, vector<64x128xbf16>, vector<2x128xf32> -> vector<2x128xf32>
    %260 = arith.addf %259, %5 : vector<2x128xf32>
    %cst_81 = arith.constant 0.000000e+00 : f32
    %261 = vector.broadcast %cst_81 : f32 to vector<2x128xf32>
    %262 = arith.subf %261, %260 : vector<2x128xf32>
    %263 = math.exp %262 : vector<2x128xf32>
    %cst_82 = arith.constant 1.000000e+00 : f32
    %264 = vector.broadcast %cst_82 : f32 to vector<2x128xf32>
    %265 = arith.addf %264, %263 : vector<2x128xf32>
    %cst_83 = arith.constant 1.000000e+00 : f32
    %266 = vector.broadcast %cst_83 : f32 to vector<2x128xf32>
    %267 = arith.divf %266, %265 : vector<2x128xf32>
    %268 = math.tanh %260 : vector<2x128xf32>
    %269 = vector.extract_strided_slice %267 {offsets = [0, 0], sizes = [2, 32], strides = [1, 1]} : vector<2x128xf32> to vector<2x32xf32>
    %270 = vector.extract_strided_slice %267 {offsets = [0, 32], sizes = [2, 32], strides = [1, 1]} : vector<2x128xf32> to vector<2x32xf32>
    %271 = vector.extract_strided_slice %268 {offsets = [0, 64], sizes = [2, 32], strides = [1, 1]} : vector<2x128xf32> to vector<2x32xf32>
    %272 = vector.extract_strided_slice %267 {offsets = [0, 96], sizes = [2, 32], strides = [1, 1]} : vector<2x128xf32> to vector<2x32xf32>
    %273 = arith.mulf %270, %231 : vector<2x32xf32>
    %274 = arith.mulf %269, %271 : vector<2x32xf32>
    %275 = arith.addf %273, %274 : vector<2x32xf32>
    %276 = math.tanh %275 : vector<2x32xf32>
    %277 = arith.mulf %272, %276 : vector<2x32xf32>
    %c10_84 = arith.constant 10 : index
    %c0_85 = arith.constant 0 : index
    %278 = vector.load %arg11[%c10_84, %c0_85] : memref<16x32xf32, #tpu.memory_space<vmem>>, vector<2x32xf32>
    tpu.vector_store %arg11[%c10_84, %c0_85], %277 {strides = array<i32>} : memref<16x32xf32, #tpu.memory_space<vmem>>, vector<2x32xf32>,
    %c12 = arith.constant 12 : index
    %c0_86 = arith.constant 0 : index
    %279 = vector.load %arg0[%c12, %c0_86] : memref<16x128xf32, #tpu.memory_space<vmem>>, vector<2x128xf32>
    %280 = arith.truncf %255 : vector<2x32xf32> to vector<2x32xbf16>
    %cst_87 = arith.constant dense<0.000000e+00> : vector<2x128xf32>
    %281 = tpu.matmul %280, %0, %cst_87 {dimension_numbers = #tpu.dot_dimension_numbers<[1], [0], [0], [1], [0, 0, 1, 1], [], []>} : vector<2x32xbf16>, vector<32x128xbf16>, vector<2x128xf32> -> vector<2x128xf32>
    %282 = arith.addf %279, %281 : vector<2x128xf32>
    %cst_88 = arith.constant 0.000000e+00 : f32
    %283 = vector.broadcast %cst_88 : f32 to vector<2x128xf32>
    %284 = arith.subf %283, %282 : vector<2x128xf32>
    %285 = math.exp %284 : vector<2x128xf32>
    %cst_89 = arith.constant 1.000000e+00 : f32
    %286 = vector.broadcast %cst_89 : f32 to vector<2x128xf32>
    %287 = arith.addf %286, %285 : vector<2x128xf32>
    %cst_90 = arith.constant 1.000000e+00 : f32
    %288 = vector.broadcast %cst_90 : f32 to vector<2x128xf32>
    %289 = arith.divf %288, %287 : vector<2x128xf32>
    %290 = math.tanh %282 : vector<2x128xf32>
    %291 = vector.extract_strided_slice %289 {offsets = [0, 0], sizes = [2, 32], strides = [1, 1]} : vector<2x128xf32> to vector<2x32xf32>
    %292 = vector.extract_strided_slice %289 {offsets = [0, 32], sizes = [2, 32], strides = [1, 1]} : vector<2x128xf32> to vector<2x32xf32>
    %293 = vector.extract_strided_slice %290 {offsets = [0, 64], sizes = [2, 32], strides = [1, 1]} : vector<2x128xf32> to vector<2x32xf32>
    %294 = vector.extract_strided_slice %289 {offsets = [0, 96], sizes = [2, 32], strides = [1, 1]} : vector<2x128xf32> to vector<2x32xf32>
    %295 = arith.mulf %292, %253 : vector<2x32xf32>
    %296 = arith.mulf %291, %293 : vector<2x32xf32>
    %297 = arith.addf %295, %296 : vector<2x32xf32>
    %298 = math.tanh %297 : vector<2x32xf32>
    %299 = arith.mulf %294, %298 : vector<2x32xf32>
    %300 = arith.truncf %299 : vector<2x32xf32> to vector<2x32xbf16>
    %301 = arith.truncf %277 : vector<2x32xf32> to vector<2x32xbf16>
    %302 = tpu.concatenate %300, %301 in 1 : vector<2x32xbf16>, vector<2x32xbf16> -> vector<2x64xbf16>
    %cst_91 = arith.constant dense<0.000000e+00> : vector<2x128xf32>
    %303 = tpu.matmul %302, %1, %cst_91 {dimension_numbers = #tpu.dot_dimension_numbers<[1], [0], [0], [1], [0, 0, 1, 1], [], []>} : vector<2x64xbf16>, vector<64x128xbf16>, vector<2x128xf32> -> vector<2x128xf32>
    %304 = arith.addf %303, %5 : vector<2x128xf32>
    %cst_92 = arith.constant 0.000000e+00 : f32
    %305 = vector.broadcast %cst_92 : f32 to vector<2x128xf32>
    %306 = arith.subf %305, %304 : vector<2x128xf32>
    %307 = math.exp %306 : vector<2x128xf32>
    %cst_93 = arith.constant 1.000000e+00 : f32
    %308 = vector.broadcast %cst_93 : f32 to vector<2x128xf32>
    %309 = arith.addf %308, %307 : vector<2x128xf32>
    %cst_94 = arith.constant 1.000000e+00 : f32
    %310 = vector.broadcast %cst_94 : f32 to vector<2x128xf32>
    %311 = arith.divf %310, %309 : vector<2x128xf32>
    %312 = math.tanh %304 : vector<2x128xf32>
    %313 = vector.extract_strided_slice %311 {offsets = [0, 0], sizes = [2, 32], strides = [1, 1]} : vector<2x128xf32> to vector<2x32xf32>
    %314 = vector.extract_strided_slice %311 {offsets = [0, 32], sizes = [2, 32], strides = [1, 1]} : vector<2x128xf32> to vector<2x32xf32>
    %315 = vector.extract_strided_slice %312 {offsets = [0, 64], sizes = [2, 32], strides = [1, 1]} : vector<2x128xf32> to vector<2x32xf32>
    %316 = vector.extract_strided_slice %311 {offsets = [0, 96], sizes = [2, 32], strides = [1, 1]} : vector<2x128xf32> to vector<2x32xf32>
    %317 = arith.mulf %314, %275 : vector<2x32xf32>
    %318 = arith.mulf %313, %315 : vector<2x32xf32>
    %319 = arith.addf %317, %318 : vector<2x32xf32>
    %320 = math.tanh %319 : vector<2x32xf32>
    %321 = arith.mulf %316, %320 : vector<2x32xf32>
    %c12_95 = arith.constant 12 : index
    %c0_96 = arith.constant 0 : index
    %322 = vector.load %arg11[%c12_95, %c0_96] : memref<16x32xf32, #tpu.memory_space<vmem>>, vector<2x32xf32>
    tpu.vector_store %arg11[%c12_95, %c0_96], %321 {strides = array<i32>} : memref<16x32xf32, #tpu.memory_space<vmem>>, vector<2x32xf32>,
    %c14 = arith.constant 14 : index
    %c0_97 = arith.constant 0 : index
    %323 = vector.load %arg0[%c14, %c0_97] : memref<16x128xf32, #tpu.memory_space<vmem>>, vector<2x128xf32>
    %324 = arith.truncf %299 : vector<2x32xf32> to vector<2x32xbf16>
    %cst_98 = arith.constant dense<0.000000e+00> : vector<2x128xf32>
    %325 = tpu.matmul %324, %0, %cst_98 {dimension_numbers = #tpu.dot_dimension_numbers<[1], [0], [0], [1], [0, 0, 1, 1], [], []>} : vector<2x32xbf16>, vector<32x128xbf16>, vector<2x128xf32> -> vector<2x128xf32>
    %326 = arith.addf %323, %325 : vector<2x128xf32>
    %cst_99 = arith.constant 0.000000e+00 : f32
    %327 = vector.broadcast %cst_99 : f32 to vector<2x128xf32>
    %328 = arith.subf %327, %326 : vector<2x128xf32>
    %329 = math.exp %328 : vector<2x128xf32>
    %cst_100 = arith.constant 1.000000e+00 : f32
    %330 = vector.broadcast %cst_100 : f32 to vector<2x128xf32>
    %331 = arith.addf %330, %329 : vector<2x128xf32>
    %cst_101 = arith.constant 1.000000e+00 : f32
    %332 = vector.broadcast %cst_101 : f32 to vector<2x128xf32>
    %333 = arith.divf %332, %331 : vector<2x128xf32>
    %334 = math.tanh %326 : vector<2x128xf32>
    %335 = vector.extract_strided_slice %333 {offsets = [0, 0], sizes = [2, 32], strides = [1, 1]} : vector<2x128xf32> to vector<2x32xf32>
    %336 = vector.extract_strided_slice %333 {offsets = [0, 32], sizes = [2, 32], strides = [1, 1]} : vector<2x128xf32> to vector<2x32xf32>
    %337 = vector.extract_strided_slice %334 {offsets = [0, 64], sizes = [2, 32], strides = [1, 1]} : vector<2x128xf32> to vector<2x32xf32>
    %338 = vector.extract_strided_slice %333 {offsets = [0, 96], sizes = [2, 32], strides = [1, 1]} : vector<2x128xf32> to vector<2x32xf32>
    %339 = arith.mulf %336, %297 : vector<2x32xf32>
    %340 = arith.mulf %335, %337 : vector<2x32xf32>
    %341 = arith.addf %339, %340 : vector<2x32xf32>
    %342 = math.tanh %341 : vector<2x32xf32>
    %343 = arith.mulf %338, %342 : vector<2x32xf32>
    %344 = arith.truncf %343 : vector<2x32xf32> to vector<2x32xbf16>
    %345 = arith.truncf %321 : vector<2x32xf32> to vector<2x32xbf16>
    %346 = tpu.concatenate %344, %345 in 1 : vector<2x32xbf16>, vector<2x32xbf16> -> vector<2x64xbf16>
    %cst_102 = arith.constant dense<0.000000e+00> : vector<2x128xf32>
    %347 = tpu.matmul %346, %1, %cst_102 {dimension_numbers = #tpu.dot_dimension_numbers<[1], [0], [0], [1], [0, 0, 1, 1], [], []>} : vector<2x64xbf16>, vector<64x128xbf16>, vector<2x128xf32> -> vector<2x128xf32>
    %348 = arith.addf %347, %5 : vector<2x128xf32>
    %cst_103 = arith.constant 0.000000e+00 : f32
    %349 = vector.broadcast %cst_103 : f32 to vector<2x128xf32>
    %350 = arith.subf %349, %348 : vector<2x128xf32>
    %351 = math.exp %350 : vector<2x128xf32>
    %cst_104 = arith.constant 1.000000e+00 : f32
    %352 = vector.broadcast %cst_104 : f32 to vector<2x128xf32>
    %353 = arith.addf %352, %351 : vector<2x128xf32>
    %cst_105 = arith.constant 1.000000e+00 : f32
    %354 = vector.broadcast %cst_105 : f32 to vector<2x128xf32>
    %355 = arith.divf %354, %353 : vector<2x128xf32>
    %356 = math.tanh %348 : vector<2x128xf32>
    %357 = vector.extract_strided_slice %355 {offsets = [0, 0], sizes = [2, 32], strides = [1, 1]} : vector<2x128xf32> to vector<2x32xf32>
    %358 = vector.extract_strided_slice %355 {offsets = [0, 32], sizes = [2, 32], strides = [1, 1]} : vector<2x128xf32> to vector<2x32xf32>
    %359 = vector.extract_strided_slice %356 {offsets = [0, 64], sizes = [2, 32], strides = [1, 1]} : vector<2x128xf32> to vector<2x32xf32>
    %360 = vector.extract_strided_slice %355 {offsets = [0, 96], sizes = [2, 32], strides = [1, 1]} : vector<2x128xf32> to vector<2x32xf32>
    %361 = arith.mulf %358, %319 : vector<2x32xf32>
    %362 = arith.mulf %357, %359 : vector<2x32xf32>
    %363 = arith.addf %361, %362 : vector<2x32xf32>
    %364 = math.tanh %363 : vector<2x32xf32>
    %365 = arith.mulf %360, %364 : vector<2x32xf32>
    %c14_106 = arith.constant 14 : index
    %c0_107 = arith.constant 0 : index
    %366 = vector.load %arg11[%c14_106, %c0_107] : memref<16x32xf32, #tpu.memory_space<vmem>>, vector<2x32xf32>
    tpu.vector_store %arg11[%c14_106, %c0_107], %365 {strides = array<i32>} : memref<16x32xf32, #tpu.memory_space<vmem>>, vector<2x32xf32>,
    %c0_108 = arith.constant 0 : index
    %c0_109 = arith.constant 0 : index
    %367 = vector.load %arg11[%c0_108, %c0_109] : memref<16x32xf32, #tpu.memory_space<vmem>>, vector<16x32xf32>
    %368 = arith.truncf %367 : vector<16x32xf32> to vector<16x32xbf16>
    %cst_110 = arith.constant dense<0.000000e+00> : vector<16x16xf32>
    %369 = tpu.matmul %368, %2, %cst_110 {dimension_numbers = #tpu.dot_dimension_numbers<[1], [0], [0], [1], [0, 0, 1, 1], [], []>} : vector<16x32xbf16>, vector<32x16xbf16>, vector<16x16xf32> -> vector<16x16xf32>
    %370 = vector.broadcast %6 : vector<1x16xf32> to vector<16x16xf32>
    %371 = arith.addf %369, %370 : vector<16x16xf32>
    %c0_111 = arith.constant 0 : index
    %c0_112 = arith.constant 0 : index
    %372 = vector.load %arg8[%c0_111, %c0_112] : memref<16x16xf32, #tpu.memory_space<vmem>>, vector<16x16xf32>
    tpu.vector_store %arg8[%c0_111, %c0_112], %371 {strides = array<i32>} : memref<16x16xf32, #tpu.memory_space<vmem>>, vector<16x16xf32>,
    %c0_113 = arith.constant 0 : index
    %c0_114 = arith.constant 0 : index
    %c0_115 = arith.constant 0 : index
    %373 = vector.load %arg9[%c0_113, %c0_114, %c0_115] : memref<2x2x32xf32, #tpu.memory_space<vmem>>, vector<1x2x32xf32>
    %374 = vector.shape_cast %373 : vector<1x2x32xf32> to vector<2x32xf32>
    %375 = vector.shape_cast %343 : vector<2x32xf32> to vector<1x2x32xf32>
    tpu.vector_store %arg9[%c0_113, %c0_114, %c0_115], %375 {strides = array<i32>} : memref<2x2x32xf32, #tpu.memory_space<vmem>>, vector<1x2x32xf32>,
    %c1_116 = arith.constant 1 : index
    %c0_117 = arith.constant 0 : index
    %c0_118 = arith.constant 0 : index
    %376 = vector.load %arg9[%c1_116, %c0_117, %c0_118] : memref<2x2x32xf32, #tpu.memory_space<vmem>>, vector<1x2x32xf32>
    %377 = vector.shape_cast %376 : vector<1x2x32xf32> to vector<2x32xf32>
    %378 = vector.shape_cast %365 : vector<2x32xf32> to vector<1x2x32xf32>
    tpu.vector_store %arg9[%c1_116, %c0_117, %c0_118], %378 {strides = array<i32>} : memref<2x2x32xf32, #tpu.memory_space<vmem>>, vector<1x2x32xf32>,
    %c0_119 = arith.constant 0 : index
    %c0_120 = arith.constant 0 : index
    %c0_121 = arith.constant 0 : index
    %379 = vector.load %arg10[%c0_119, %c0_120, %c0_121] : memref<2x2x32xf32, #tpu.memory_space<vmem>>, vector<1x2x32xf32>
    %380 = vector.shape_cast %379 : vector<1x2x32xf32> to vector<2x32xf32>
    %381 = vector.shape_cast %341 : vector<2x32xf32> to vector<1x2x32xf32>
    tpu.vector_store %arg10[%c0_119, %c0_120, %c0_121], %381 {strides = array<i32>} : memref<2x2x32xf32, #tpu.memory_space<vmem>>, vector<1x2x32xf32>,
    %c1_122 = arith.constant 1 : index
    %c0_123 = arith.constant 0 : index
    %c0_124 = arith.constant 0 : index
    %382 = vector.load %arg10[%c1_122, %c0_123, %c0_124] : memref<2x2x32xf32, #tpu.memory_space<vmem>>, vector<1x2x32xf32>
    %383 = vector.shape_cast %382 : vector<1x2x32xf32> to vector<2x32xf32>
    %384 = vector.shape_cast %363 : vector<2x32xf32> to vector<1x2x32xf32>
    tpu.vector_store %arg10[%c1_122, %c0_123, %c0_124], %384 {strides = array<i32>} : memref<2x2x32xf32, #tpu.memory_space<vmem>>, vector<1x2x32xf32>,
    return
  }
}

</mosaic_0001>

<bundles_post_ra>
// kernel: text_generation_forward.1
= control target key start
LH: loop header
LB: loop body
LE: loop exit
PB: predicated region body
PF: predicated region fallthrough
CT: control target
= control target key end

     0   :  { %16 = vsyncpa [#allocation4], 0  ;;  %v1929_v1 = vmov 0.0   ;;  %vm1930_vm0 = vmmov 0   ;;  %vm79_vm1 = vcmask 261120   ;;  %s2455_s0 = inlined_call_operand.vmem [shape: f32[16,128], index: 0, kind: input, shape index: {}]   ;;  %s2456_s1 = inlined_call_operand.vmem [shape: bf16[32,128], index: 1, kind: input, shape index: {}]   ;;  %s2457_s2 = inlined_call_operand.vmem [shape: bf16[64,128], index: 2, kind: input, shape index: {}]   ;;  %s2458_s3 = inlined_call_operand.vmem [shape: f32[1,128], index: 3, kind: input, shape index: {}]   ;;  %s2459_s4 = inlined_call_operand.vmem [shape: bf16[32,16], index: 4, kind: input, shape index: {}]   ;;  %s2460_s5 = inlined_call_operand.vmem [shape: f32[1,16], index: 5, kind: input, shape index: {}]   ;;  %s2461_s6 = inlined_call_operand.vmem [shape: f32[2,2,32], index: 6, kind: input, shape index: {}, may-alias: {6,7}]   ;;  %s2462_s7 = inlined_call_operand.vmem [shape: f32[2,2,32], index: 7, kind: input, shape index: {}, may-alias: {6,7}]   ;;  %s2463_s8 = inlined_call_operand.hbm [shape: f32[16,16], index: 8, kind: output, shape index: {0}]   ;;  %s2464_s9 = inlined_call_operand.hbm [shape: f32[2,2,32], index: 9, kind: output, shape index: {1}]   ;;  %s2465_s10 = inlined_call_operand.hbm [shape: f32[2,2,32], index: 10, kind: output, shape index: {2}]  }
   0x1   :  { %v1998_v0 = vld [vmem:[%s2456_s1] sm:$0xff]   ;;  %1543 = vmatprep.subr.bf16.mxu0 %v1929_v1  ;;  %1551 = vmatprep.subr.bf16.mxu1 %v1929_v1  ;;  %v2006_v2 = vld [vmem:[%s2456_s1 + $0x8] sm:$0xff]  }
   0x2   :  { %1544 = vmatpush3.bf16.msra.mxu0 %v1998_v0  ;;  %1547 = vmatprep.mubr.msk.bf16.mxu0 %vm1930_vm0, %v1929_v1  ;;  %v59_v3 = vld [vmem:[%s2461_s6] sm:$0x3] }
   0x3   :  { %1545 = vmatprep.subr.bf16.mxu0 %v1929_v1  ;;  %1559 = vmatprep.mubr.msk.bf16.mxu1 %vm1930_vm0, %v1929_v1  ;;  %v66_v4 = vpack.c.bf16 %v59_v3, %v59_v3 }
   0x6   :  { %1546 = vmatpush3.bf16.msra.mxu0 %v2006_v2 }
   0x7   :  { %1563 = vmatprep.subr.bf16.mxu0 %v1929_v1 }
   0x8   :  { %17 = vsyncpa [#allocation6], 0  ;;  %v65_v5 = vld [vmem:[%s2455_s0] sm:$0x3]  ;;  %s1931_s20 = smov 64   ;;  %s1932_s23 = smov 32  }
   0x9   :  { %1548 = vmatmul.mubr.msk.bf16.vlgmr.msra.gmra.mrb[0].mxu0 %vm79_vm1, %v66_v4  ;;  %v60_v12 = vld [vmem:[%s2462_s7] sm:$0x3]  ;;  %v2046_v25 = vld [vmem:[%s2457_s2 + $0x8] sm:$0xff]   ;;  %v1448_v26 = vld [vmem:[%s2461_s6 + $0x2] sm:$0x3]  ;;  %vm187_vm2 = vcmask 523264  }
   0xa   :  { %1564 = vmatpush3.bf16.msra.mxu0 %v1998_v0  ;;  %1567 = vmatprep.mubr.msk.bf16.mxu0 %vm1930_vm0, %v1929_v1  ;;  %v2040_v24 = vld [vmem:[%s2457_s2] sm:$0xff]   ;;  %v2056_v27 = vld [vmem:[%s2457_s2 + $0x10] sm:$0xff]   ;;  %v153_v29 = vpack.c.bf16 %v1448_v26, %v1448_v26  ;;  %v2064_v30 = vld [vmem:[%s2457_s2 + $0x18] sm:$0xff]   ;;  %vm262_vm3 = vcmask 254976  }
   0xb   :  { %1565 = vmatprep.subr.bf16.mxu0 %v1929_v1  ;;  %1552 = vmatpush3.bf16.msra.mxu1 %v2040_v24  ;;  %v264_v37 = vld [vmem:[%s2455_s0 + $0x2] sm:$0x3]  ;;  %v2096_v38 = vld [vmem:[%s2458_s3] ss:$0 sm:$0xff] }
   0xc   :  { %1553 = vmatprep.subr.bf16.mxu1 %v1929_v1  ;;  %v1449_v51 = vld [vmem:[%s2462_s7 + $0x2] sm:$0x3] }
   0xe   :  { %1566 = vmatpush3.bf16.msra.mxu0 %v2006_v2 }
   0xf   :  { %1571 = vmatprep.subr.bf16.mxu0 %v1929_v1  ;;  %1554 = vmatpush3.bf16.msra.mxu1 %v2046_v25 }
  0x10   :  { %1555 = vmatprep.subr.bf16.mxu1 %v1929_v1 }
  0x13   :  { %1556 = vmatpush3.bf16.msra.mxu1 %v2056_v27 }
  0x14   :  { %1557 = vmatprep.subr.bf16.mxu1 %v1929_v1 }
  0x17   :  { %1558 = vmatpush3.bf16.msra.mxu1 %v2064_v30 }
  0x18   :  { %1583 = vmatprep.subr.bf16.mxu1 %v1929_v1 }
  0xdc   :  { %v117_v6 = vpop.f32.mrb[0].mxu0 }
  0xdd   :  { %v123_v7 = vadd.f32 %v117_v6, %v65_v5  ;;  %v1549_v8 = vpop.f32.mrb[1].mxu0 }
  0xde   :  { %v120_v9 = vpop.f32.mrb[2].mxu0 }
  0xdf   :  { %1730 = vtanh.f32 %v123_v7  ;;  %v1550_v10 = vpop.f32.mrb[3].mxu0  ;;  %v124_v13 = vsub.f32 0.0, %v123_v7 }
  0xe1   :  { %v125_v14 = vmul.f32 1.442695, %v124_v13 }
  0xe3   :  { %1732 = vpow2.f32 %v125_v14 }
  0xe9   :  { %v1731_v11 = vpop.eup %1730 }
  0xea   :  { %137 = vrot.lane.b32.xlu0 %v1731_v11, %s1931_s20 }
  0xed   :  { %v1733_v15 = vpop.eup %1732 }
  0xee   :  { %132 = vrot.lane.b32.xlu0 %v60_v12, %s1932_s23  ;;  %v127_v16 = vadd.f32 1.0, %v1733_v15 }
  0xf0   :  { %1734 = vrcp.f32 %v127_v16 }
  0xfa   :  { %v1735_v17 = vpop.eup %1734 }
 0x15c   :  { %v138_v18 = vpop.permute.xlu0 %137 }
 0x15d   :  { %v140_v19 = vmul.f32 %v1735_v17, %v138_v18 }
 0x15f   :  { %142 = vrot.lane.b32.xlu1 %v140_v19, %s1932_s23 }
 0x160   :  { %v133_v20 = vpop.permute.xlu0 %132 }
 0x161   :  { %v135_v21 = vmul.f32 %v1735_v17, %v133_v20 }
 0x1d1   :  { %v143_v22 = vpop.permute.xlu1 %142 }
 0x1d2   :  { %v2034_v23 = vadd.f32 %v143_v22, %v135_v21 }
 0x1d4   :  { %1736 = vtanh.f32 %v2034_v23 }
 0x1de   :  { %v1737_v28 = vpop.eup %1736 }
 0x1df   :  { %148 = vrot.lane.b32.xlu1 %v1737_v28, %s1931_s20 }
 0x1e3   :  { %158 = vrot.lane.b32.xlu1 %v153_v29, %s1932_s23 }
 0x251   :  { %v149_v31 = vpop.permute.xlu1 %148 }
 0x252   :  { %v151_v32 = vmul.f32 %v1735_v17, %v149_v31 }
 0x254   :  { %v152_v33 = vpack.c.bf16 %v151_v32, %v151_v32 }
 0x255   :  { %v159_v34 = vpop.permute.xlu1 %158 }
 0x256   :  { %155 = vrot.lane.b32.xlu0 %v152_v33, %s1932_s23 }
 0x2c8   :  { %v156_v35 = vpop.permute.xlu0 %155 }
 0x2c9   :  { %v162_v36 = vsel %vm79_vm1, %v156_v35, %v159_v34  ;;  %1568 = vmatmul.mubr.msk.bf16.vlgmr.msra.gmra.mrb[4].mxu0 %vm79_vm1, %v156_v35 }
 0x2ca   :  { %1560 = vmatmul.mubr.msk.bf16.vlgmr.msra.gmra.mrb[0].mxu1 %vm187_vm2, %v162_v36  ;;  %1572 = vmatpush3.bf16.msra.mxu0 %v2040_v24 }
 0x2cb   :  { %1573 = vmatprep.subr.bf16.mxu0 %v1929_v1  ;;  %1584 = vmatpush3.bf16.msra.mxu1 %v1998_v0 }
 0x2cc   :  { %1585 = vmatprep.subr.bf16.mxu1 %v1929_v1  ;;  %1587 = vmatprep.mubr.msk.bf16.mxu1 %vm1930_vm0, %v1929_v1 }
 0x2cd   :  { %1579 = vmatprep.mubr.msk.bf16.mxu0 %vm1930_vm0, %v1929_v1 }
 0x2ce   :  { %1574 = vmatpush3.bf16.msra.mxu0 %v2046_v25 }
 0x2cf   :  { %1575 = vmatprep.subr.bf16.mxu0 %v1929_v1  ;;  %1586 = vmatpush3.bf16.msra.mxu1 %v2006_v2 }
 0x2d0   :  { %1591 = vmatprep.subr.bf16.mxu1 %v1929_v1 }
 0x2d2   :  { %1576 = vmatpush3.bf16.msra.mxu0 %v2056_v27 }
 0x2d3   :  { %1577 = vmatprep.subr.bf16.mxu0 %v1929_v1 }
 0x2d6   :  { %1578 = vmatpush3.bf16.msra.mxu0 %v2064_v30 }
 0x2d7   :  { %1603 = vmatprep.subr.bf16.mxu0 %v1929_v1 }
 0x39c   :  { %v301_v39 = vpop.f32.mrb[4].mxu0 }
 0x39d   :  { %v307_v40 = vadd.f32 %v301_v39, %v264_v37  ;;  %v224_v41 = vpop.f32.mrb[0].mxu1  ;;  %v1569_v42 = vpop.f32.mrb[5].mxu0 }
 0x39e   :  { %v225_v43 = vadd.f32 %v2096_v38, %v224_v41  ;;  %v1561_v44 = vpop.f32.mrb[1].mxu1  ;;  %v304_v45 = vpop.f32.mrb[6].mxu0 }
 0x39f   :  { %1738 = vtanh.f32 %v307_v40  ;;  %v227_v46 = vpop.f32.mrb[2].mxu1  ;;  %v1570_v47 = vpop.f32.mrb[7].mxu0  ;;  %v308_v52 = vsub.f32 0.0, %v307_v40 }
 0x3a0   :  { %1740 = vtanh.f32 %v225_v43  ;;  %v1562_v48 = vpop.f32.mrb[3].mxu1  ;;  %v230_v53 = vsub.f32 0.0, %v225_v43 }
 0x3a1   :  { %v309_v54 = vmul.f32 1.442695, %v308_v52 }
 0x3a2   :  { %v231_v55 = vmul.f32 1.442695, %v230_v53 }
 0x3a3   :  { %1742 = vpow2.f32 %v309_v54 }
 0x3a4   :  { %1744 = vpow2.f32 %v231_v55 }
 0x3a9   :  { %v1739_v49 = vpop.eup %1738 }
 0x3aa   :  { %v1741_v50 = vpop.eup %1740  ;;  %317 = vrot.lane.b32.xlu1 %v1739_v49, %s1931_s20 }
 0x3ab   :  { %243 = vrot.lane.b32.xlu0 %v1741_v50, %s1931_s20 }
 0x3ad   :  { %v1743_v56 = vpop.eup %1742 }
 0x3ae   :  { %v1745_v57 = vpop.eup %1744  ;;  %v311_v58 = vadd.f32 1.0, %v1743_v56 }
 0x3af   :  { %238 = vrot.lane.b32.xlu0 %v1449_v51, %s1932_s23  ;;  %v233_v59 = vadd.f32 1.0, %v1745_v57 }
 0x3b0   :  { %1746 = vrcp.f32 %v311_v58 }
 0x3b1   :  { %1748 = vrcp.f32 %v233_v59 }
 0x3ba   :  { %v1747_v60 = vpop.eup %1746 }
 0x3bb   :  { %v1749_v62 = vpop.eup %1748  ;;  %v315_v6 = vmul.f32 %v1747_v60, %v2034_v23  ;;  %v414_v23 = vld [vmem:[%s2455_s0 + $0x4] sm:$0x3] }
 0x41c   :  { %v318_v61 = vpop.permute.xlu1 %317 }
 0x41d   :  { %v320_v63 = vmul.f32 %v1747_v60, %v318_v61  ;;  %v244_v3 = vpop.permute.xlu0 %243 }
 0x41e   :  { %v246_v4 = vmul.f32 %v1749_v62, %v244_v3 }
 0x41f   :  { %322 = vrot.lane.b32.xlu0 %v320_v63, %s1932_s23 }
 0x420   :  { %248 = vrot.lane.b32.xlu1 %v246_v4, %s1932_s23 }
 0x421   :  { %v239_v5 = vpop.permute.xlu0 %238 }
 0x422   :  { %v241_v7 = vmul.f32 %v1749_v62, %v239_v5 }
 0x491   :  { %v323_v8 = vpop.permute.xlu0 %322 }
 0x492   :  { %v2108_v9 = vadd.f32 %v323_v8, %v315_v6  ;;  %v249_v10 = vpop.permute.xlu1 %248 }
 0x493   :  { %v2110_v11 = vadd.f32 %v249_v10, %v241_v7 }
 0x494   :  { %1750 = vtanh.f32 %v2108_v9 }
 0x495   :  { %1752 = vtanh.f32 %v2110_v11 }
 0x49e   :  { %v1751_v12 = vpop.eup %1750 }
 0x49f   :  { %v1753_v13 = vpop.eup %1752  ;;  %328 = vrot.lane.b32.xlu0 %v1751_v12, %s1931_s20 }
 0x4a0   :  { %254 = vrot.lane.b32.xlu1 %v1753_v13, %s1931_s20 }
 0x511   :  { %v329_v14 = vpop.permute.xlu0 %328 }
 0x512   :  { %v331_v15 = vmul.f32 %v1747_v60, %v329_v14  ;;  %v255_v16 = vpop.permute.xlu1 %254 }
 0x513   :  { %v2116_v17 = vmul.f32 %v1749_v62, %v255_v16 }
 0x514   :  { %v332_v18 = vpack.c.bf16 %v331_v15, %v331_v15 }
 0x515   :  { %v333_v19 = vpack.c.bf16 %v2116_v17, %v2116_v17 }
 0x516   :  { %335 = vrot.lane.b32.xlu1 %v332_v18, %s1932_s23 }
 0x517   :  { %338 = vrot.lane.b32.xlu0 %v333_v19, %s1931_s20 }
 0x588   :  { %v336_v20 = vpop.permute.xlu1 %335 }
 0x589   :  { %1588 = vmatmul.mubr.msk.bf16.vlgmr.msra.gmra.mrb[4].mxu1 %vm79_vm1, %v336_v20  ;;  %v339_v21 = vpop.permute.xlu0 %338 }
 0x58a   :  { %v342_v22 = vsel %vm79_vm1, %v336_v20, %v339_v21  ;;  %1592 = vmatpush3.bf16.msra.mxu1 %v2040_v24  ;;  %1599 = vmatprep.mubr.msk.bf16.mxu1 %vm1930_vm0, %v1929_v1 }
 0x58b   :  { %1580 = vmatmul.mubr.msk.bf16.vlgmr.msra.gmra.mrb[8].mxu0 %vm187_vm2, %v342_v22  ;;  %1593 = vmatprep.subr.bf16.mxu1 %v1929_v1 }
 0x58c   :  { %1604 = vmatpush3.bf16.msra.mxu0 %v1998_v0  ;;  %1607 = vmatprep.mubr.msk.bf16.mxu0 %vm1930_vm0, %v1929_v1 }
 0x58d   :  { %1605 = vmatprep.subr.bf16.mxu0 %v1929_v1 }
 0x58e   :  { %1594 = vmatpush3.bf16.msra.mxu1 %v2046_v25 }
 0x58f   :  { %1595 = vmatprep.subr.bf16.mxu1 %v1929_v1 }
 0x590   :  { %1606 = vmatpush3.bf16.msra.mxu0 %v2006_v2 }
 0x591   :  { %1611 = vmatprep.subr.bf16.mxu0 %v1929_v1 }
 0x592   :  { %1596 = vmatpush3.bf16.msra.mxu1 %v2056_v27 }
 0x593   :  { %1597 = vmatprep.subr.bf16.mxu1 %v1929_v1 }
 0x596   :  { %1598 = vmatpush3.bf16.msra.mxu1 %v2064_v30 }
 0x597   :  { %1623 = vmatprep.subr.bf16.mxu1 %v1929_v1 }
 0x65c   :  { %v451_v26 = vpop.f32.mrb[4].mxu1 }
 0x65d   :  { %v457_v28 = vadd.f32 %v451_v26, %v414_v23  ;;  %v1589_v29 = vpop.f32.mrb[5].mxu1 }
 0x65e   :  { %v379_v31 = vpop.f32.mrb[8].mxu0  ;;  %v454_v32 = vpop.f32.mrb[6].mxu1 }
 0x65f   :  { %1754 = vtanh.f32 %v457_v28  ;;  %v380_v33 = vadd.f32 %v2096_v38, %v379_v31  ;;  %v1581_v34 = vpop.f32.mrb[9].mxu0  ;;  %v1590_v35 = vpop.f32.mrb[7].mxu1  ;;  %v458_v41 = vsub.f32 0.0, %v457_v28 }
 0x660   :  { %v382_v36 = vpop.f32.mrb[10].mxu0 }
 0x661   :  { %1756 = vtanh.f32 %v380_v33  ;;  %v1582_v37 = vpop.f32.mrb[11].mxu0  ;;  %v385_v42 = vsub.f32 0.0, %v380_v33  ;;  %v459_v43 = vmul.f32 1.442695, %v458_v41 }
 0x663   :  { %v386_v44 = vmul.f32 1.442695, %v385_v42  ;;  %1758 = vpow2.f32 %v459_v43 }
 0x665   :  { %1760 = vpow2.f32 %v386_v44 }
 0x669   :  { %v1755_v39 = vpop.eup %1754 }
 0x66a   :  { %467 = vrot.lane.b32.xlu0 %v1755_v39, %s1931_s20 }
 0x66b   :  { %v1757_v40 = vpop.eup %1756 }
 0x66c   :  { %394 = vrot.lane.b32.xlu1 %v1757_v40, %s1931_s20 }
 0x66d   :  { %v1759_v45 = vpop.eup %1758 }
 0x66e   :  { %v461_v47 = vadd.f32 1.0, %v1759_v45 }
 0x66f   :  { %v1761_v46 = vpop.eup %1760 }
 0x670   :  { %v388_v48 = vadd.f32 1.0, %v1761_v46  ;;  %1762 = vrcp.f32 %v461_v47 }
 0x672   :  { %1764 = vrcp.f32 %v388_v48 }
 0x67a   :  { %v1763_v49 = vpop.eup %1762 }
 0x67b   :  { %v465_v55 = vmul.f32 %v1763_v49, %v2108_v9 }
 0x67c   :  { %v1765_v52 = vpop.eup %1764 }
 0x67d   :  { %v392_v58 = vmul.f32 %v1765_v52, %v2110_v11  ;;  %v564_v11 = vld [vmem:[%s2455_s0 + $0x6] sm:$0x3] }
 0x6dc   :  { %v468_v50 = vpop.permute.xlu0 %467 }
 0x6dd   :  { %v470_v51 = vmul.f32 %v1763_v49, %v468_v50 }
 0x6de   :  { %v395_v53 = vpop.permute.xlu1 %394 }
 0x6df   :  { %v397_v54 = vmul.f32 %v1765_v52, %v395_v53  ;;  %472 = vrot.lane.b32.xlu0 %v470_v51, %s1932_s23 }
 0x6e1   :  { %399 = vrot.lane.b32.xlu1 %v397_v54, %s1932_s23 }
 0x751   :  { %v473_v56 = vpop.permute.xlu0 %472 }
 0x752   :  { %v2150_v57 = vadd.f32 %v473_v56, %v465_v55 }
 0x753   :  { %v400_v59 = vpop.permute.xlu1 %399 }
 0x754   :  { %1766 = vtanh.f32 %v2150_v57  ;;  %v2154_v60 = vadd.f32 %v400_v59, %v392_v58 }
 0x756   :  { %1768 = vtanh.f32 %v2154_v60 }
 0x75e   :  { %v1767_v61 = vpop.eup %1766 }
 0x75f   :  { %478 = vrot.lane.b32.xlu0 %v1767_v61, %s1931_s20  ;;  %v714_v61 = vld [vmem:[%s2455_s0 + $0x8] sm:$0x3] }
 0x760   :  { %v1769_v62 = vpop.eup %1768 }
 0x761   :  { %405 = vrot.lane.b32.xlu1 %v1769_v62, %s1931_s20 }
 0x7d1   :  { %v479_v63 = vpop.permute.xlu0 %478 }
 0x7d2   :  { %v481_v3 = vmul.f32 %v1763_v49, %v479_v63 }
 0x7d3   :  { %v406_v4 = vpop.permute.xlu1 %405 }
 0x7d4   :  { %v482_v5 = vpack.c.bf16 %v481_v3, %v481_v3  ;;  %v2159_v6 = vmul.f32 %v1765_v52, %v406_v4 }
 0x7d6   :  { %v483_v7 = vpack.c.bf16 %v2159_v6, %v2159_v6  ;;  %485 = vrot.lane.b32.xlu1 %v482_v5, %s1932_s23 }
 0x7d8   :  { %488 = vrot.lane.b32.xlu0 %v483_v7, %s1931_s20 }
 0x848   :  { %v486_v8 = vpop.permute.xlu1 %485 }
 0x849   :  { %1608 = vmatmul.mubr.msk.bf16.vlgmr.msra.gmra.mrb[12].mxu0 %vm79_vm1, %v486_v8 }
 0x84a   :  { %v489_v9 = vpop.permute.xlu0 %488  ;;  %1612 = vmatpush3.bf16.msra.mxu0 %v2040_v24  ;;  %1619 = vmatprep.mubr.msk.bf16.mxu0 %vm1930_vm0, %v1929_v1 }
 0x84b   :  { %v492_v10 = vsel %vm79_vm1, %v486_v8, %v489_v9  ;;  %1613 = vmatprep.subr.bf16.mxu0 %v1929_v1 }
 0x84c   :  { %1600 = vmatmul.mubr.msk.bf16.vlgmr.msra.gmra.mrb[8].mxu1 %vm187_vm2, %v492_v10 }
 0x84d   :  { %1624 = vmatpush3.bf16.msra.mxu1 %v1998_v0  ;;  %1627 = vmatprep.mubr.msk.bf16.mxu1 %vm1930_vm0, %v1929_v1 }
 0x84e   :  { %1614 = vmatpush3.bf16.msra.mxu0 %v2046_v25  ;;  %1625 = vmatprep.subr.bf16.mxu1 %v1929_v1 }
 0x84f   :  { %1615 = vmatprep.subr.bf16.mxu0 %v1929_v1 }
 0x851   :  { %1626 = vmatpush3.bf16.msra.mxu1 %v2006_v2 }
 0x852   :  { %1616 = vmatpush3.bf16.msra.mxu0 %v2056_v27  ;;  %1631 = vmatprep.subr.bf16.mxu1 %v1929_v1 }
 0x853   :  { %1617 = vmatprep.subr.bf16.mxu0 %v1929_v1 }
 0x856   :  { %1618 = vmatpush3.bf16.msra.mxu0 %v2064_v30 }
 0x857   :  { %1643 = vmatprep.subr.bf16.mxu0 %v1929_v1 }
 0x91c   :  { %v601_v12 = vpop.f32.mrb[12].mxu0 }
 0x91d   :  { %v607_v13 = vadd.f32 %v601_v12, %v564_v11  ;;  %v1609_v14 = vpop.f32.mrb[13].mxu0 }
 0x91e   :  { %v604_v15 = vpop.f32.mrb[14].mxu0 }
 0x91f   :  { %1770 = vtanh.f32 %v607_v13  ;;  %v529_v16 = vpop.f32.mrb[8].mxu1  ;;  %v1610_v18 = vpop.f32.mrb[15].mxu0  ;;  %v608_v28 = vsub.f32 0.0, %v607_v13 }
 0x920   :  { %v530_v19 = vadd.f32 %v2096_v38, %v529_v16  ;;  %v1601_v20 = vpop.f32.mrb[9].mxu1 }
 0x921   :  { %v532_v21 = vpop.f32.mrb[10].mxu1  ;;  %v609_v31 = vmul.f32 1.442695, %v608_v28 }
 0x922   :  { %1772 = vtanh.f32 %v530_v19  ;;  %v1602_v22 = vpop.f32.mrb[11].mxu1  ;;  %v535_v29 = vsub.f32 0.0, %v530_v19 }
 0x923   :  { %1774 = vpow2.f32 %v609_v31 }
 0x924   :  { %v536_v32 = vmul.f32 1.442695, %v535_v29 }
 0x926   :  { %1776 = vpow2.f32 %v536_v32 }
 0x929   :  { %v1771_v23 = vpop.eup %1770 }
 0x92a   :  { %617 = vrot.lane.b32.xlu0 %v1771_v23, %s1931_s20 }
 0x92c   :  { %v1773_v26 = vpop.eup %1772 }
 0x92d   :  { %544 = vrot.lane.b32.xlu1 %v1773_v26, %s1931_s20  ;;  %v1775_v33 = vpop.eup %1774 }
 0x92e   :  { %v611_v35 = vadd.f32 1.0, %v1775_v33 }
 0x930   :  { %v1777_v34 = vpop.eup %1776  ;;  %1778 = vrcp.f32 %v611_v35 }
 0x931   :  { %v538_v36 = vadd.f32 1.0, %v1777_v34 }
 0x933   :  { %1780 = vrcp.f32 %v538_v36 }
 0x93a   :  { %v1779_v37 = vpop.eup %1778 }
 0x93b   :  { %v615_v44 = vmul.f32 %v1779_v37, %v2150_v57 }
 0x93d   :  { %v1781_v41 = vpop.eup %1780 }
 0x93e   :  { %v542_v47 = vmul.f32 %v1781_v41, %v2154_v60 }
 0x99c   :  { %v618_v39 = vpop.permute.xlu0 %617 }
 0x99d   :  { %v620_v40 = vmul.f32 %v1779_v37, %v618_v39 }
 0x99f   :  { %v545_v42 = vpop.permute.xlu1 %544  ;;  %622 = vrot.lane.b32.xlu0 %v620_v40, %s1932_s23 }
 0x9a0   :  { %v547_v43 = vmul.f32 %v1781_v41, %v545_v42 }
 0x9a2   :  { %549 = vrot.lane.b32.xlu1 %v547_v43, %s1932_s23 }
 0xa11   :  { %v623_v45 = vpop.permute.xlu0 %622 }
 0xa12   :  { %v2193_v46 = vadd.f32 %v623_v45, %v615_v44 }
 0xa14   :  { %1782 = vtanh.f32 %v2193_v46  ;;  %v550_v48 = vpop.permute.xlu1 %549 }
 0xa15   :  { %v2197_v49 = vadd.f32 %v550_v48, %v542_v47 }
 0xa17   :  { %1784 = vtanh.f32 %v2197_v49 }
 0xa1e   :  { %v1783_v50 = vpop.eup %1782 }
 0xa1f   :  { %628 = vrot.lane.b32.xlu0 %v1783_v50, %s1931_s20 }
 0xa21   :  { %v1785_v51 = vpop.eup %1784 }
 0xa22   :  { %555 = vrot.lane.b32.xlu1 %v1785_v51, %s1931_s20  ;;  %v864_v51 = vld [vmem:[%s2455_s0 + $0xa] sm:$0x3] }
 0xa91   :  { %v629_v52 = vpop.permute.xlu0 %628 }
 0xa92   :  { %v631_v53 = vmul.f32 %v1779_v37, %v629_v52 }
 0xa94   :  { %v632_v54 = vpack.c.bf16 %v631_v53, %v631_v53  ;;  %v556_v55 = vpop.permute.xlu1 %555 }
 0xa95   :  { %v2202_v56 = vmul.f32 %v1781_v41, %v556_v55 }
 0xa96   :  { %635 = vrot.lane.b32.xlu1 %v632_v54, %s1932_s23 }
 0xa97   :  { %v633_v57 = vpack.c.bf16 %v2202_v56, %v2202_v56 }
 0xa99   :  { %638 = vrot.lane.b32.xlu0 %v633_v57, %s1931_s20 }
 0xb08   :  { %v636_v58 = vpop.permute.xlu1 %635 }
 0xb09   :  { %1628 = vmatmul.mubr.msk.bf16.vlgmr.msra.gmra.mrb[12].mxu1 %vm79_vm1, %v636_v58 }
 0xb0a   :  { %1632 = vmatpush3.bf16.msra.mxu1 %v2040_v24  ;;  %1639 = vmatprep.mubr.msk.bf16.mxu1 %vm1930_vm0, %v1929_v1 }
 0xb0b   :  { %v639_v59 = vpop.permute.xlu0 %638  ;;  %1633 = vmatprep.subr.bf16.mxu1 %v1929_v1 }
 0xb0c   :  { %v642_v60 = vsel %vm79_vm1, %v636_v58, %v639_v59 }
 0xb0d   :  { %1620 = vmatmul.mubr.msk.bf16.vlgmr.msra.gmra.mrb[16].mxu0 %vm187_vm2, %v642_v60 }
 0xb0e   :  { %1644 = vmatpush3.bf16.msra.mxu0 %v1998_v0  ;;  %1634 = vmatpush3.bf16.msra.mxu1 %v2046_v25 }
 0xb0f   :  { %1645 = vmatprep.subr.bf16.mxu0 %v1929_v1  ;;  %1635 = vmatprep.subr.bf16.mxu1 %v1929_v1 }
 0xb10   :  { %1647 = vmatprep.mubr.msk.bf16.mxu0 %vm1930_vm0, %v1929_v1 }
 0xb12   :  { %1646 = vmatpush3.bf16.msra.mxu0 %v2006_v2  ;;  %1636 = vmatpush3.bf16.msra.mxu1 %v2056_v27 }
 0xb13   :  { %1637 = vmatprep.subr.bf16.mxu1 %v1929_v1  ;;  %1651 = vmatprep.subr.bf16.mxu0 %v1929_v1 }
 0xb16   :  { %1638 = vmatpush3.bf16.msra.mxu1 %v2064_v30 }
 0xb17   :  { %1663 = vmatprep.subr.bf16.mxu1 %v1929_v1 }
 0xbdc   :  { %v751_v62 = vpop.f32.mrb[12].mxu1 }
 0xbdd   :  { %v757_v63 = vadd.f32 %v751_v62, %v714_v61  ;;  %v1629_v3 = vpop.f32.mrb[13].mxu1 }
 0xbde   :  { %v754_v4 = vpop.f32.mrb[14].mxu1 }
 0xbdf   :  { %1786 = vtanh.f32 %v757_v63  ;;  %v1630_v5 = vpop.f32.mrb[15].mxu1  ;;  %v758_v14 = vsub.f32 0.0, %v757_v63 }
 0xbe0   :  { %v679_v7 = vpop.f32.mrb[16].mxu0 }
 0xbe1   :  { %v680_v8 = vadd.f32 %v2096_v38, %v679_v7  ;;  %v1621_v9 = vpop.f32.mrb[17].mxu0  ;;  %v759_v15 = vmul.f32 1.442695, %v758_v14 }
 0xbe2   :  { %v682_v10 = vpop.f32.mrb[18].mxu0 }
 0xbe3   :  { %v1622_v11 = vpop.f32.mrb[19].mxu0  ;;  %1788 = vtanh.f32 %v680_v8  ;;  %v685_v16 = vsub.f32 0.0, %v680_v8 }
 0xbe4   :  { %1790 = vpow2.f32 %v759_v15 }
 0xbe5   :  { %v686_v18 = vmul.f32 1.442695, %v685_v16 }
 0xbe7   :  { %1792 = vpow2.f32 %v686_v18 }
 0xbe9   :  { %v1787_v12 = vpop.eup %1786 }
 0xbea   :  { %767 = vrot.lane.b32.xlu0 %v1787_v12, %s1931_s20 }
 0xbed   :  { %v1789_v13 = vpop.eup %1788 }
 0xbee   :  { %694 = vrot.lane.b32.xlu1 %v1789_v13, %s1931_s20  ;;  %v1791_v19 = vpop.eup %1790 }
 0xbef   :  { %v761_v20 = vadd.f32 1.0, %v1791_v19 }
 0xbf1   :  { %v1793_v21 = vpop.eup %1792  ;;  %1794 = vrcp.f32 %v761_v20 }
 0xbf2   :  { %v688_v22 = vadd.f32 1.0, %v1793_v21 }
 0xbf4   :  { %1796 = vrcp.f32 %v688_v22 }
 0xbfb   :  { %v1795_v23 = vpop.eup %1794 }
 0xbfc   :  { %v765_v33 = vmul.f32 %v1795_v23, %v2193_v46 }
 0xbfe   :  { %v1797_v29 = vpop.eup %1796 }
 0xbff   :  { %v692_v36 = vmul.f32 %v1797_v29, %v2197_v49 }
 0xc5c   :  { %v768_v26 = vpop.permute.xlu0 %767 }
 0xc5d   :  { %v770_v28 = vmul.f32 %v1795_v23, %v768_v26 }
 0xc5f   :  { %772 = vrot.lane.b32.xlu0 %v770_v28, %s1932_s23 }
 0xc60   :  { %v695_v31 = vpop.permute.xlu1 %694 }
 0xc61   :  { %v697_v32 = vmul.f32 %v1797_v29, %v695_v31 }
 0xc63   :  { %699 = vrot.lane.b32.xlu1 %v697_v32, %s1932_s23 }
 0xcd1   :  { %v773_v34 = vpop.permute.xlu0 %772 }
 0xcd2   :  { %v2236_v35 = vadd.f32 %v773_v34, %v765_v33 }
 0xcd4   :  { %1798 = vtanh.f32 %v2236_v35 }
 0xcd5   :  { %v700_v37 = vpop.permute.xlu1 %699 }
 0xcd6   :  { %v2240_v39 = vadd.f32 %v700_v37, %v692_v36 }
 0xcd8   :  { %1800 = vtanh.f32 %v2240_v39 }
 0xcde   :  { %v1799_v40 = vpop.eup %1798 }
 0xcdf   :  { %778 = vrot.lane.b32.xlu0 %v1799_v40, %s1931_s20 }
 0xce2   :  { %v1801_v41 = vpop.eup %1800 }
 0xce3   :  { %705 = vrot.lane.b32.xlu1 %v1801_v41, %s1931_s20 }
 0xd51   :  { %v779_v42 = vpop.permute.xlu0 %778 }
 0xd52   :  { %v781_v43 = vmul.f32 %v1795_v23, %v779_v42 }
 0xd54   :  { %v782_v44 = vpack.c.bf16 %v781_v43, %v781_v43 }
 0xd55   :  { %v706_v45 = vpop.permute.xlu1 %705 }
 0xd56   :  { %785 = vrot.lane.b32.xlu1 %v782_v44, %s1932_s23  ;;  %v2246_v46 = vmul.f32 %v1797_v29, %v706_v45 }
 0xd58   :  { %v783_v47 = vpack.c.bf16 %v2246_v46, %v2246_v46 }
 0xd5a   :  { %788 = vrot.lane.b32.xlu0 %v783_v47, %s1931_s20 }
 0xdc8   :  { %v786_v48 = vpop.permute.xlu1 %785 }
 0xdc9   :  { %1648 = vmatmul.mubr.msk.bf16.vlgmr.msra.gmra.mrb[20].mxu0 %vm79_vm1, %v786_v48 }
 0xdca   :  { %1652 = vmatpush3.bf16.msra.mxu0 %v2040_v24  ;;  %1659 = vmatprep.mubr.msk.bf16.mxu0 %vm1930_vm0, %v1929_v1 }
 0xdcb   :  { %1653 = vmatprep.subr.bf16.mxu0 %v1929_v1 }
 0xdcc   :  { %v789_v49 = vpop.permute.xlu0 %788 }
 0xdcd   :  { %v792_v50 = vsel %vm79_vm1, %v786_v48, %v789_v49 }
 0xdce   :  { %1654 = vmatpush3.bf16.msra.mxu0 %v2046_v25  ;;  %1640 = vmatmul.mubr.msk.bf16.vlgmr.msra.gmra.mrb[16].mxu1 %vm187_vm2, %v792_v50 }
 0xdcf   :  { %1655 = vmatprep.subr.bf16.mxu0 %v1929_v1  ;;  %1664 = vmatpush3.bf16.msra.mxu1 %v1998_v0 }
 0xdd0   :  { %1667 = vmatprep.mubr.msk.bf16.mxu1 %vm1930_vm0, %v1929_v1  ;;  %1665 = vmatprep.subr.bf16.mxu1 %v1929_v1 }
 0xdd2   :  { %1656 = vmatpush3.bf16.msra.mxu0 %v2056_v27 }
 0xdd3   :  { %1657 = vmatprep.subr.bf16.mxu0 %v1929_v1  ;;  %1666 = vmatpush3.bf16.msra.mxu1 %v2006_v2 }
 0xdd4   :  { %1671 = vmatprep.subr.bf16.mxu1 %v1929_v1 }
 0xdd6   :  { %1658 = vmatpush3.bf16.msra.mxu0 %v2064_v30 }
 0xdd7   :  { %1683 = vmatprep.subr.bf16.mxu0 %v1929_v1 }
 0xe9c   :  { %v901_v52 = vpop.f32.mrb[20].mxu0 }
 0xe9d   :  { %v907_v53 = vadd.f32 %v901_v52, %v864_v51  ;;  %v1649_v54 = vpop.f32.mrb[21].mxu0 }
 0xe9e   :  { %v904_v55 = vpop.f32.mrb[22].mxu0 }
 0xe9f   :  { %1802 = vtanh.f32 %v907_v53  ;;  %v1650_v57 = vpop.f32.mrb[23].mxu0  ;;  %v908_v4 = vsub.f32 0.0, %v907_v53 }
 0xea1   :  { %v829_v58 = vpop.f32.mrb[16].mxu1  ;;  %v909_v5 = vmul.f32 1.442695, %v908_v4 }
 0xea2   :  { %v830_v59 = vadd.f32 %v2096_v38, %v829_v58  ;;  %v1641_v60 = vpop.f32.mrb[17].mxu1 }
 0xea3   :  { %v832_v61 = vpop.f32.mrb[18].mxu1 }
 0xea4   :  { %1804 = vtanh.f32 %v830_v59  ;;  %v1642_v62 = vpop.f32.mrb[19].mxu1  ;;  %v835_v7 = vsub.f32 0.0, %v830_v59 }
 0xea5   :  { %1806 = vpow2.f32 %v909_v5 }
 0xea6   :  { %v836_v8 = vmul.f32 1.442695, %v835_v7 }
 0xea8   :  { %1808 = vpow2.f32 %v836_v8 }
 0xea9   :  { %v1803_v63 = vpop.eup %1802 }
 0xeaa   :  { %917 = vrot.lane.b32.xlu0 %v1803_v63, %s1931_s20 }
 0xeae   :  { %v1805_v3 = vpop.eup %1804 }
 0xeaf   :  { %844 = vrot.lane.b32.xlu1 %v1805_v3, %s1931_s20  ;;  %v1807_v9 = vpop.eup %1806 }
 0xeb0   :  { %v911_v10 = vadd.f32 1.0, %v1807_v9 }
 0xeb2   :  { %v1809_v11 = vpop.eup %1808  ;;  %1810 = vrcp.f32 %v911_v10 }
 0xeb3   :  { %v838_v12 = vadd.f32 1.0, %v1809_v11 }
 0xeb5   :  { %1812 = vrcp.f32 %v838_v12 }
 0xebc   :  { %v1811_v13 = vpop.eup %1810 }
 0xebd   :  { %v915_v20 = vmul.f32 %v1811_v13, %v2236_v35 }
 0xebf   :  { %v1813_v16 = vpop.eup %1812 }
 0xec0   :  { %v842_v23 = vmul.f32 %v1813_v16, %v2240_v39 }
 0xf1c   :  { %v918_v14 = vpop.permute.xlu0 %917 }
 0xf1d   :  { %v920_v15 = vmul.f32 %v1811_v13, %v918_v14 }
 0xf1f   :  { %922 = vrot.lane.b32.xlu0 %v920_v15, %s1932_s23 }
 0xf21   :  { %v845_v18 = vpop.permute.xlu1 %844 }
 0xf22   :  { %v847_v19 = vmul.f32 %v1813_v16, %v845_v18 }
 0xf24   :  { %849 = vrot.lane.b32.xlu1 %v847_v19, %s1932_s23 }
 0xf91   :  { %v923_v21 = vpop.permute.xlu0 %922 }
 0xf92   :  { %v2279_v22 = vadd.f32 %v923_v21, %v915_v20 }
 0xf94   :  { %1814 = vtanh.f32 %v2279_v22 }
 0xf96   :  { %v850_v26 = vpop.permute.xlu1 %849 }
 0xf97   :  { %v2283_v28 = vadd.f32 %v850_v26, %v842_v23 }
 0xf99   :  { %1816 = vtanh.f32 %v2283_v28 }
 0xf9e   :  { %v1815_v29 = vpop.eup %1814 }
 0xf9f   :  { %928 = vrot.lane.b32.xlu0 %v1815_v29, %s1931_s20 }
 0xfa3   :  { %v1817_v31 = vpop.eup %1816 }
 0xfa4   :  { %855 = vrot.lane.b32.xlu1 %v1817_v31, %s1931_s20 }
0x1011   :  { %v929_v32 = vpop.permute.xlu0 %928 }
0x1012   :  { %v931_v33 = vmul.f32 %v1811_v13, %v929_v32 }
0x1014   :  { %v932_v34 = vpack.c.bf16 %v931_v33, %v931_v33 }
0x1016   :  { %935 = vrot.lane.b32.xlu1 %v932_v34, %s1932_s23  ;;  %v856_v35 = vpop.permute.xlu1 %855 }
0x1017   :  { %v2289_v36 = vmul.f32 %v1813_v16, %v856_v35 }
0x1019   :  { %v933_v37 = vpack.c.bf16 %v2289_v36, %v2289_v36 }
0x101b   :  { %938 = vrot.lane.b32.xlu0 %v933_v37, %s1931_s20 }
0x1088   :  { %v936_v39 = vpop.permute.xlu1 %935 }
0x1089   :  { %1668 = vmatmul.mubr.msk.bf16.vlgmr.msra.gmra.mrb[20].mxu1 %vm79_vm1, %v936_v39 }
0x108a   :  { %1672 = vmatpush3.bf16.msra.mxu1 %v2040_v24  ;;  %1679 = vmatprep.mubr.msk.bf16.mxu1 %vm1930_vm0, %v1929_v1 }
0x108b   :  { %1673 = vmatprep.subr.bf16.mxu1 %v1929_v1 }
0x108d   :  { %v939_v40 = vpop.permute.xlu0 %938 }
0x108e   :  { %1674 = vmatpush3.bf16.msra.mxu1 %v2046_v25  ;;  %v942_v41 = vsel %vm79_vm1, %v936_v39, %v939_v40 }
0x108f   :  { %1675 = vmatprep.subr.bf16.mxu1 %v1929_v1  ;;  %1660 = vmatmul.mubr.msk.bf16.vlgmr.msra.gmra.mrb[24].mxu0 %vm187_vm2, %v942_v41 }
0x1090   :  { %1684 = vmatpush3.bf16.msra.mxu0 %v1998_v0  ;;  %1687 = vmatprep.mubr.msk.bf16.mxu0 %vm1930_vm0, %v1929_v1  ;;  %v1014_v0 = vld [vmem:[%s2455_s0 + $0xc] sm:$0x3] }
0x1091   :  { %1685 = vmatprep.subr.bf16.mxu0 %v1929_v1 }
0x1092   :  { %1676 = vmatpush3.bf16.msra.mxu1 %v2056_v27 }
0x1093   :  { %1677 = vmatprep.subr.bf16.mxu1 %v1929_v1 }
0x1094   :  { %1686 = vmatpush3.bf16.msra.mxu0 %v2006_v2 }
0x1095   :  { %1691 = vmatprep.subr.bf16.mxu0 %v1929_v1 }
0x1096   :  { %1678 = vmatpush3.bf16.msra.mxu1 %v2064_v30 }
0x1097   :  { %1703 = vmatprep.subr.bf16.mxu1 %v1929_v1 }
0x115c   :  { %v1051_v42 = vpop.f32.mrb[20].mxu1 }
0x115d   :  { %v1057_v43 = vadd.f32 %v1051_v42, %v1014_v0  ;;  %v1669_v44 = vpop.f32.mrb[21].mxu1 }
0x115e   :  { %v1054_v45 = vpop.f32.mrb[22].mxu1 }
0x115f   :  { %1818 = vtanh.f32 %v1057_v43  ;;  %v1670_v47 = vpop.f32.mrb[23].mxu1  ;;  %v1058_v54 = vsub.f32 0.0, %v1057_v43 }
0x1161   :  { %v1059_v55 = vmul.f32 1.442695, %v1058_v54 }
0x1162   :  { %v979_v48 = vpop.f32.mrb[24].mxu0 }
0x1163   :  { %v980_v49 = vadd.f32 %v2096_v38, %v979_v48  ;;  %v1661_v2 = vpop.f32.mrb[25].mxu0 }
0x1164   :  { %v982_v50 = vpop.f32.mrb[26].mxu0 }
0x1165   :  { %1820 = vtanh.f32 %v980_v49  ;;  %v1662_v51 = vpop.f32.mrb[27].mxu0  ;;  %v985_v57 = vsub.f32 0.0, %v980_v49 }
0x1166   :  { %1822 = vpow2.f32 %v1059_v55 }
0x1167   :  { %v986_v58 = vmul.f32 1.442695, %v985_v57 }
0x1169   :  { %v1819_v52 = vpop.eup %1818  ;;  %1824 = vpow2.f32 %v986_v58 }
0x116a   :  { %1067 = vrot.lane.b32.xlu0 %v1819_v52, %s1931_s20 }
0x116f   :  { %v1821_v53 = vpop.eup %1820 }
0x1170   :  { %994 = vrot.lane.b32.xlu1 %v1821_v53, %s1931_s20  ;;  %v1823_v59 = vpop.eup %1822 }
0x1171   :  { %v1061_v60 = vadd.f32 1.0, %v1823_v59 }
0x1173   :  { %v1825_v61 = vpop.eup %1824  ;;  %1826 = vrcp.f32 %v1061_v60 }
0x1174   :  { %v988_v62 = vadd.f32 1.0, %v1825_v61 }
0x1176   :  { %1828 = vrcp.f32 %v988_v62 }
0x117d   :  { %v1827_v63 = vpop.eup %1826 }
0x117e   :  { %v1065_v9 = vmul.f32 %v1827_v63, %v2279_v22 }
0x1180   :  { %v1829_v5 = vpop.eup %1828 }
0x1181   :  { %v992_v12 = vmul.f32 %v1829_v5, %v2283_v28 }
0x11dc   :  { %v1068_v3 = vpop.permute.xlu0 %1067 }
0x11dd   :  { %v1070_v4 = vmul.f32 %v1827_v63, %v1068_v3 }
0x11df   :  { %1072 = vrot.lane.b32.xlu0 %v1070_v4, %s1932_s23 }
0x11e2   :  { %v995_v7 = vpop.permute.xlu1 %994 }
0x11e3   :  { %v997_v8 = vmul.f32 %v1829_v5, %v995_v7 }
0x11e5   :  { %999 = vrot.lane.b32.xlu1 %v997_v8, %s1932_s23 }
0x1251   :  { %v1073_v10 = vpop.permute.xlu0 %1072 }
0x1252   :  { %v2322_v11 = vadd.f32 %v1073_v10, %v1065_v9 }
0x1254   :  { %1830 = vtanh.f32 %v2322_v11 }
0x1257   :  { %v1000_v13 = vpop.permute.xlu1 %999 }
0x1258   :  { %v2326_v14 = vadd.f32 %v1000_v13, %v992_v12  ;;  %v1858_v13 = vld [vmem:[%s2458_s3] ss:$0 sm:$0xff]  ;;  %s1933_s3 = smov 96  }
0x125a   :  { %1832 = vtanh.f32 %v2326_v14 }
0x125e   :  { %v1831_v15 = vpop.eup %1830 }
0x125f   :  { %1078 = vrot.lane.b32.xlu0 %v1831_v15, %s1931_s20 }
0x1264   :  { %v1833_v16 = vpop.eup %1832 }
0x1265   :  { %1005 = vrot.lane.b32.xlu1 %v1833_v16, %s1931_s20 }
0x12d1   :  { %v1079_v18 = vpop.permute.xlu0 %1078 }
0x12d2   :  { %v1081_v19 = vmul.f32 %v1827_v63, %v1079_v18 }
0x12d4   :  { %v1082_v20 = vpack.c.bf16 %v1081_v19, %v1081_v19 }
0x12d6   :  { %1085 = vrot.lane.b32.xlu1 %v1082_v20, %s1932_s23 }
0x12d7   :  { %v1006_v21 = vpop.permute.xlu1 %1005 }
0x12d8   :  { %v2332_v22 = vmul.f32 %v1829_v5, %v1006_v21 }
0x12da   :  { %v1083_v23 = vpack.c.bf16 %v2332_v22, %v2332_v22 }
0x12dc   :  { %1088 = vrot.lane.b32.xlu0 %v1083_v23, %s1931_s20 }
0x1348   :  { %v1086_v26 = vpop.permute.xlu1 %1085 }
0x1349   :  { %1688 = vmatmul.mubr.msk.bf16.vlgmr.msra.gmra.mrb[28].mxu0 %vm79_vm1, %v1086_v26 }
0x134a   :  { %1692 = vmatpush3.bf16.msra.mxu0 %v2040_v24  ;;  %1699 = vmatprep.mubr.msk.bf16.mxu0 %vm1930_vm0, %v1929_v1  ;;  %v1164_v24 = vld [vmem:[%s2455_s0 + $0xe] sm:$0x3] }
0x134b   :  { %1693 = vmatprep.subr.bf16.mxu0 %v1929_v1 }
0x134e   :  { %1694 = vmatpush3.bf16.msra.mxu0 %v2046_v25  ;;  %v1089_v28 = vpop.permute.xlu0 %1088 }
0x134f   :  { %1695 = vmatprep.subr.bf16.mxu0 %v1929_v1  ;;  %v1092_v29 = vsel %vm79_vm1, %v1086_v26, %v1089_v28 }
0x1350   :  { %1680 = vmatmul.mubr.msk.bf16.vlgmr.msra.gmra.mrb[24].mxu1 %vm187_vm2, %v1092_v29 }
0x1351   :  { %1707 = vmatprep.mubr.msk.bf16.mxu1 %vm1930_vm0, %v1929_v1 }
0x1352   :  { %1696 = vmatpush3.bf16.msra.mxu0 %v2056_v27 }
0x1353   :  { %1697 = vmatprep.subr.bf16.mxu0 %v1929_v1 }
0x1356   :  { %1698 = vmatpush3.bf16.msra.mxu0 %v2064_v30 }
0x141c   :  { %v1201_v25 = vpop.f32.mrb[28].mxu0 }
0x141d   :  { %v1207_v31 = vadd.f32 %v1201_v25, %v1164_v24  ;;  %v1689_v32 = vpop.f32.mrb[29].mxu0 }
0x141e   :  { %v1204_v33 = vpop.f32.mrb[30].mxu0 }
0x141f   :  { %1834 = vtanh.f32 %v1207_v31  ;;  %v1690_v34 = vpop.f32.mrb[31].mxu0  ;;  %v1208_v0 = vsub.f32 0.0, %v1207_v31 }
0x1421   :  { %v1209_v42 = vmul.f32 1.442695, %v1208_v0 }
0x1423   :  { %v1129_v35 = vpop.f32.mrb[24].mxu1 }
0x1424   :  { %v1130_v27 = vadd.f32 %v2096_v38, %v1129_v35  ;;  %v1681_v37 = vpop.f32.mrb[25].mxu1 }
0x1425   :  { %v1132_v39 = vpop.f32.mrb[26].mxu1  ;;  %v1728_v37 = vld [vmem:[%s2459_s4] sm:$0xff]  }
0x1426   :  { %1836 = vtanh.f32 %v1130_v27  ;;  %v1682_v40 = vpop.f32.mrb[27].mxu1  ;;  %v1135_v43 = vsub.f32 0.0, %v1130_v27  ;;  %1704 = vmatpush3.bf16.msra.mxu1 %v1728_v37 }
0x1427   :  { %1838 = vpow2.f32 %v1209_v42  ;;  %1705 = vmatprep.subr.bf16.mxu1 %v1929_v1 }
0x1428   :  { %v1136_v44 = vmul.f32 1.442695, %v1135_v43 }
0x1429   :  { %v1835_v41 = vpop.eup %1834 }
0x142a   :  { %1217 = vrot.lane.b32.xlu0 %v1835_v41, %s1931_s20  ;;  %1840 = vpow2.f32 %v1136_v44 }
0x1430   :  { %v1837_v30 = vpop.eup %1836 }
0x1431   :  { %1144 = vrot.lane.b32.xlu1 %v1837_v30, %s1931_s20  ;;  %v1839_v45 = vpop.eup %1838 }
0x1432   :  { %v1211_v47 = vadd.f32 1.0, %v1839_v45 }
0x1434   :  { %1842 = vrcp.f32 %v1211_v47  ;;  %v1841_v38 = vpop.eup %1840 }
0x1435   :  { %v1138_v48 = vadd.f32 1.0, %v1841_v38 }
0x1437   :  { %1844 = vrcp.f32 %v1138_v48 }
0x143e   :  { %v1843_v49 = vpop.eup %1842 }
0x143f   :  { %v1215_v54 = vmul.f32 %v1843_v49, %v2322_v11 }
0x1441   :  { %v1845_v51 = vpop.eup %1844 }
0x1442   :  { %v1142_v58 = vmul.f32 %v1845_v51, %v2326_v14 }
0x149c   :  { %v1218_v2 = vpop.permute.xlu0 %1217 }
0x149d   :  { %v1220_v50 = vmul.f32 %v1843_v49, %v1218_v2 }
0x149f   :  { %1222 = vrot.lane.b32.xlu0 %v1220_v50, %s1932_s23 }
0x14a3   :  { %v1145_v52 = vpop.permute.xlu1 %1144 }
0x14a4   :  { %v1147_v53 = vmul.f32 %v1845_v51, %v1145_v52 }
0x14a6   :  { %1149 = vrot.lane.b32.xlu1 %v1147_v53, %s1932_s23 }
0x1511   :  { %v1223_v55 = vpop.permute.xlu0 %1222 }
0x1512   :  { %v2360_v57 = vadd.f32 %v1223_v55, %v1215_v54 }
0x1514   :  { %1846 = vtanh.f32 %v2360_v57 }
0x1518   :  { %v1150_v59 = vpop.permute.xlu1 %1149 }
0x1519   :  { %v1152_v60 = vadd.f32 %v1150_v59, %v1142_v58 }
0x151b   :  { %1848 = vtanh.f32 %v1152_v60 }
0x151e   :  { %v1847_v61 = vpop.eup %1846 }
0x151f   :  { %1228 = vrot.lane.b32.xlu0 %v1847_v61, %s1931_s20 }
0x1525   :  { %v1849_v62 = vpop.eup %1848 }
0x1526   :  { %1155 = vrot.lane.b32.xlu1 %v1849_v62, %s1931_s20 }
0x1591   :  { %v1229_v63 = vpop.permute.xlu0 %1228 }
0x1592   :  { %v1231_v3 = vmul.f32 %v1843_v49, %v1229_v63 }
0x1594   :  { %v1232_v4 = vpack.c.bf16 %v1231_v3, %v1231_v3 }
0x1596   :  { %1235 = vrot.lane.b32.xlu1 %v1232_v4, %s1932_s23 }
0x1598   :  { %v1156_v5 = vpop.permute.xlu1 %1155 }
0x1599   :  { %v1158_v7 = vmul.f32 %v1845_v51, %v1156_v5 }
0x159b   :  { %v1233_v8 = vpack.c.bf16 %v1158_v7, %v1158_v7 }
0x159d   :  { %1238 = vrot.lane.b32.xlu0 %v1233_v8, %s1931_s20 }
0x1608   :  { %v1236_v9 = vpop.permute.xlu1 %1235 }
0x160f   :  { %v1239_v10 = vpop.permute.xlu0 %1238 }
0x1610   :  { %v1242_v11 = vsel %vm79_vm1, %v1236_v9, %v1239_v10 }
0x1611   :  { %1700 = vmatmul.mubr.msk.bf16.vlgmr.msra.gmra.mrb[32].mxu0 %vm187_vm2, %v1242_v11 }
0x16e4   :  { %v1279_v12 = vpop.f32.mrb[32].mxu0 }
0x16e5   :  { %v1280_v14 = vadd.f32 %v1858_v13, %v1279_v12  ;;  %v1701_v15 = vpop.f32.mrb[33].mxu0 }
0x16e6   :  { %v1282_v16 = vpop.f32.mrb[34].mxu0 }
0x16e7   :  { %1850 = vtanh.f32 %v1280_v14  ;;  %v1702_v18 = vpop.f32.mrb[35].mxu0  ;;  %v1285_v20 = vsub.f32 0.0, %v1280_v14 }
0x16e9   :  { %v1286_v21 = vmul.f32 1.442695, %v1285_v20 }
0x16eb   :  { %1852 = vpow2.f32 %v1286_v21 }
0x16f1   :  { %v1851_v19 = vpop.eup %1850 }
0x16f2   :  { %1294 = vrot.lane.b32.xlu1 %v1851_v19, %s1931_s20 }
0x16f5   :  { %v1853_v23 = vpop.eup %1852 }
0x16f6   :  { %v1288_v26 = vadd.f32 1.0, %v1853_v23 }
0x16f8   :  { %1854 = vrcp.f32 %v1288_v26 }
0x1702   :  { %v1855_v28 = vpop.eup %1854 }
0x1703   :  { %v1292_v25 = vmul.f32 %v1855_v28, %v1152_v60 }
0x1764   :  { %v1295_v29 = vpop.permute.xlu1 %1294 }
0x1765   :  { %v1297_v24 = vmul.f32 %v1855_v28, %v1295_v29 }
0x1767   :  { %1299 = vrot.lane.b32.xlu0 %v1297_v24, %s1932_s23 }
0x176b   :  { %259 = vrot.lane.b32.xlu0 %v2116_v17, %s1932_s23 }
0x176f   :  { %560 = vrot.lane.b32.xlu0 %v2202_v56, %s1932_s23 }
0x1773   :  { %860 = vrot.lane.b32.xlu0 %v2289_v36, %s1932_s23 }
0x1777   :  { %1160 = vrot.lane.b32.xlu0 %v1158_v7, %s1932_s23 }
0x177b   :  { %1383 = vrot.lane.b32.xlu0 %v1231_v3, %s1932_s23 }
0x17d9   :  { %v1300_v31 = vpop.permute.xlu0 %1299 }
0x17da   :  { %v1302_v32 = vadd.f32 %v1300_v31, %v1292_v25 }
0x17dc   :  { %1856 = vtanh.f32 %v1302_v32  ;;  %1395 = vrot.lane.b32.xlu0 %v1302_v32, %s1933_s3 }
0x17dd   :  { %v260_v33 = vpop.permute.xlu0 %259 }
0x17de   :  { %263 = vst.msk [vmem:[#allocation2] sm:$0x3] %vm262_vm3, %v260_v33 }
0x17e1   :  { %v561_v17 = vpop.permute.xlu0 %560 }
0x17e2   :  { %563 = vst.msk [vmem:[#allocation2 + $0x4] sm:$0x3] %vm262_vm3, %v561_v17 }
0x17e5   :  { %v861_v56 = vpop.permute.xlu0 %860 }
0x17e6   :  { %v1857_v34 = vpop.eup %1856  ;;  %863 = vst.msk [vmem:[#allocation2 + $0x8] sm:$0x3] %vm262_vm3, %v861_v56 }
0x17e7   :  { %1305 = vrot.lane.b32.xlu1 %v1857_v34, %s1931_s20 }
0x17e9   :  { %v1161_v36 = vpop.permute.xlu0 %1160 }
0x17ea   :  { %1163 = vst.msk [vmem:[#allocation2 + $0xc] sm:$0x3] %vm262_vm3, %v1161_v36 }
0x17eb   :  { %410 = vrot.lane.b32.xlu1 %v2159_v6, %s1932_s23  ;;  %v1729_v6 = vld [vmem:[%s2459_s4 + $0x8] sm:$0xff]   ;;  %s1934_s4 = smov [#allocation5]  }
0x17ec   :  { %1706 = vmatpush3.bf16.msra.mxu1 %v1729_v6  ;;  %s1417_s2 = sshll.u32 %s1934_s4, 4  ;;  %s1418_s2 = int_to_ptr.vmem [resolvable:$true] %s1417_s2 }
0x17ed   :  { %v1384_v35 = vpop.permute.xlu0 %1383  ;;  %s1859_s6 = scalar_lea.vmem %s1418_s2, 64  ;;  %p1864_p1 = scmp.lt.s32.totalorder %s1418_s2, %s1418_s2 }
0x17ee   :  { %1386 = vst.msk [vmem:[#allocation5] sm:$0x3] %vm262_vm3, %v1384_v35  ;;  %p1860_p0 = scmp.ne.s32.totalorder %s1418_s2, %s1859_s6  ;;  %p1865_p2 = scmp.lt.s32.totalorder %s1859_s6, %s1859_s6 }
0x17ef   :  { %710 = vrot.lane.b32.xlu1 %v2246_v46, %s1932_s23 }
0x17f0   :  { %p1866_p3 = por %p1865_p2, %p1864_p1 }
0x17f2   :  { %p1867_p4 = pnand %p1866_p3, %p1860_p0 }
0x17f3   :  { %1010 = vrot.lane.b32.xlu1 %v2332_v22, %s1932_s23 }
0x184e   :  { %v1396_v27 = vpop.permute.xlu0 %1395 }
0x184f   :  { %1399 = vst.msk [vmem:[#allocation7 + $0x2] sm:$0x3] %vm262_vm3, %v1396_v27 }
0x1859   :  { %v1306_v39 = vpop.permute.xlu1 %1305 }
0x185a   :  { %v1308_v46 = vmul.f32 %v1855_v28, %v1306_v39 }
0x185c   :  { %1310 = vrot.lane.b32.xlu1 %v1308_v46, %s1932_s23 }
0x185d   :  { %v411_v22 = vpop.permute.xlu1 %410 }
0x185e   :  { %413 = vst.msk [vmem:[#allocation2 + $0x2] sm:$0x3] %vm262_vm3, %v411_v22 }
0x1860   :  { %1390 = vrot.lane.b32.xlu1 %v2360_v57, %s1933_s3 }
0x1861   :  { %v711_v40 = vpop.permute.xlu1 %710 }
0x1862   :  { %713 = vst.msk [vmem:[#allocation2 + $0x6] sm:$0x3] %vm262_vm3, %v711_v40 }
0x1865   :  { %v1011_v41 = vpop.permute.xlu1 %1010 }
0x1866   :  { %1013 = vst.msk [vmem:[#allocation2 + $0xa] sm:$0x3] %vm262_vm3, %v1011_v41 }
0x1869   :  { %v1314_v0 = vld [vmem:[#allocation2] sm:$0xff] }
0x18ce   :  { %v1311_v1 = vpop.permute.xlu1 %1310 }
0x18cf   :  { %1313 = vst.msk [vmem:[#allocation2 + $0xe] sm:$0x3] %vm262_vm3, %v1311_v1  ;;  %1388 = vst.msk [vmem:[#allocation5 + $0x2] sm:$0x3] %vm262_vm3, %v1311_v1 }
0x18d2   :  { %v1391_v30 = vpop.permute.xlu1 %1390 }
0x18d3   :  { %1393 = vst.msk [vmem:[#allocation7] sm:$0x3] %vm262_vm3, %v1391_v30 }
0x18d6   :  { %v1315_v42 = vld [vmem:[#allocation2 + $0x8] sm:$0xff] }
0x18d7   :  { %v1316_v43 = vpack.c.bf16 %v1315_v42, %v1314_v0 }
0x18d9   :  { %1708 = vmatmul.mubr.msk.bf16.vlgmr.msra.gmra.mrb[28].mxu1 %vm79_vm1, %v1316_v43 }
0x18da   :  { %1870 = shalt.err (!%p1867_p4)
}
0x18db   :  { %s1871_s16 = scalar_lea.hbm %s2464_s9, 64 }
0x18dc   :  { %p1872_p5 = scmp.ne.s32.totalorder %s2464_s9, %s1871_s16  ;;  %p1875_p6 = scmp.lt.u32.totalorder %s1871_s16, %s2464_s9 }
0x18de   :  { %p1877_p7 = pnand %p1875_p6, %p1872_p5 }
0x18e0   :  { %1880 = shalt.err (!%p1877_p7)
}
0x18e1   :  { %s1935_s19 = smov 2   ;;  %s1936_s24 = smov [#allocation7]  }
0x18e2   :  { %1423 = dma.vmem_to_hbm [thread:$0]  %s1418_s2, 64, %s2464_s9, [#allocation6], %s1932_s23, %s1932_s23, %s1935_s19  }
0x18e3   :  { %s1429_s25 = sshll.u32 %s1936_s24, 4  ;;  %s1430_s25 = int_to_ptr.vmem [resolvable:$true] %s1429_s25 }
0x18e4   :  { %s1881_s26 = scalar_lea.vmem %s1430_s25, 64  ;;  %p1886_p9 = scmp.lt.s32.totalorder %s1430_s25, %s1430_s25 }
0x18e5   :  { %p1882_p8 = scmp.ne.s32.totalorder %s1430_s25, %s1881_s26  ;;  %p1887_p10 = scmp.lt.s32.totalorder %s1881_s26, %s1881_s26 }
0x18e7   :  { %p1888_p11 = por %p1887_p10, %p1886_p9 }
0x18e9   :  { %p1889_p12 = pnand %p1888_p11, %p1882_p8 }
0x18eb   :  { %1892 = shalt.err (!%p1889_p12)
}
0x18ec   :  { %s1893_s29 = scalar_lea.hbm %s2465_s10, 64 }
0x18ed   :  { %p1894_p13 = scmp.ne.s32.totalorder %s2465_s10, %s1893_s29  ;;  %p1897_p0 = scmp.lt.u32.totalorder %s1893_s29, %s2465_s10 }
0x18ef   :  { %p1899_p1 = pnand %p1897_p0, %p1894_p13 }
0x18f1   :  { %1902 = shalt.err (!%p1899_p1)
}
0x18f2   :  { %1435 = dma.vmem_to_hbm [thread:$0]  %s1430_s25, 64, %s2465_s10, [#allocation6], %s1932_s23, %s1932_s23, %s1935_s19   ;;  %vm1379_vm4 = vcmask 130048  }
0x18f3   :  { %v1472_v44 = vld [vmem:[%s2460_s5] ss:$0 sm:$0xff]  ;;  %s1937_s4 = smov [#allocation3]  }
0x18f4   :  { %s1405_s2 = sshll.u32 %s1937_s4, 4  ;;  %s1406_s2 = int_to_ptr.vmem [resolvable:$true] %s1405_s2 }
0x18f5   :  { %s1903_s6 = scalar_lea.vmem %s1406_s2, 256  ;;  %p1908_p3 = scmp.lt.s32.totalorder %s1406_s2, %s1406_s2 }
0x18f6   :  { %p1904_p2 = scmp.ne.s32.totalorder %s1406_s2, %s1903_s6  ;;  %p1909_p4 = scmp.lt.s32.totalorder %s1903_s6, %s1903_s6 }
0x18f8   :  { %p1910_p5 = por %p1909_p4, %p1908_p3 }
0x18fa   :  { %p1911_p6 = pnand %p1910_p5, %p1904_p2 }
0x19ac   :  { %v1372_v45 = vpop.f32.mrb[28].mxu1 }
0x19ad   :  { %v1373_v47 = vadd.f32 %v1472_v44, %v1372_v45  ;;  %v1709_v38 = vpop.f32.mrb[29].mxu1 }
0x19ae   :  { %v1375_v48 = vpop.f32.mrb[30].mxu1 }
0x19af   :  { %1380 = vst.msk [vmem:[#allocation3] sm:$0xff] %vm1379_vm4, %v1373_v47  ;;  %v1376_v49 = vadd.f32 %v1472_v44, %v1375_v48  ;;  %v1710_v2 = vpop.f32.mrb[31].mxu1 }
0x19b1   :  { %1381 = vst.msk [vmem:[#allocation3 + $0x8] sm:$0xff] %vm1379_vm4, %v1376_v49 }
0x19b2   :  { %1914 = shalt.err (!%p1911_p6)
}
0x19b3   :  { %s1915_s23 = scalar_lea.hbm %s2463_s8, 256 }
0x19b4   :  { %p1916_p7 = scmp.ne.s32.totalorder %s2463_s8, %s1915_s23  ;;  %p1919_p8 = scmp.lt.u32.totalorder %s1915_s23, %s2463_s8 }
0x19b6   :  { %p1921_p9 = pnand %p1919_p8, %p1916_p7 }
0x19b8   :  { %1924 = shalt.err (!%p1921_p9)
}
0x19b9   :  { %s1938_s7 = smov 128   ;;  %s1939_s18 = smov 8  }
0x19ba   :  { %1411 = dma.vmem_to_hbm [thread:$0]  %s1406_s2, 256, %s2463_s8, [#allocation4], %s1938_s7, %s1938_s7, %s1939_s18  }
0x19bb   :  { %1925 = dma.done.wait [#allocation4], 256  }
0x19bc   :  { %1926 = vsyncadd [#allocation4], 4294967040 }
0x19bd   :  { %1927 = dma.done.wait [#allocation6], 128  }
0x19be   :  { %1928 = vsyncadd [#allocation6], 4294967168 }
0x19bf   :  { %1445 = vsyncpa [#allocation4], 1 }
0x19c0   :  { %1446 = vsyncpa [#allocation6], 1 }

</bundles_post_ra>
